<compile_context>
chip_gen: v7x
topology: tpu7x:2x2x1
jax: 0.10.0
libtpu: 0.0.40
codegen_flags: <defaults>
</compile_context>

<pallas_src>
import functools

import jax
import jax.numpy as jnp
from jax.experimental import pallas as pl
from jax.experimental.pallas import tpu as pltpu

_EPS = 1e-5
_NEG_INF = -1e30
_REF_PREC = jax.lax.Precision.HIGHEST


# --------------------------------------------------------------------------------------
# Fused per-layer kernel
# --------------------------------------------------------------------------------------

_LAYER_WEIGHT_ORDER = (
    "self_wqkv", "self_bqkv", "self_wo", "self_bo", "norm1_g", "norm1_b",
    "cross_wq", "cross_bq", "cross_wkv", "cross_bkv", "cross_wo", "cross_bo",
    "norm2_g", "norm2_b",
    "ffn_w1", "ffn_b1", "ffn_w2", "ffn_b2", "norm3_g", "norm3_b",
)


def _decoder_layer_kernel(*refs, nhead, scale, eps, causal,
                          has_tgt_mask, has_mem_mask):
    f32, bf16 = jnp.float32, jnp.bfloat16

    it = iter(refs)
    x_ref = next(it)                                   # (T, E)
    mem_ref = next(it)                                 # (S, E)
    tmask_ref = next(it) if has_tgt_mask else None     # (T, T) additive, optional
    mmask_ref = next(it) if has_mem_mask else None     # (T, S) additive, optional
    (wqkv_ref, bqkv_ref, wo_s_ref, bo_s_ref, n1g_ref, n1b_ref,
     wq_c_ref, bq_c_ref, wkv_c_ref, bkv_c_ref, wo_c_ref, bo_c_ref,
     n2g_ref, n2b_ref,
     w1_ref, b1_ref, w2_ref, b2_ref, n3g_ref, n3b_ref,
     o_ref) = it

    T, E = x_ref.shape
    dh = E // nhead

    def matmul(x, w_ref, b_ref):
        # bf16 x bf16 MXU matmul, f32 accumulation; bias add in f32.
        y = jnp.dot(x.astype(bf16), w_ref[...], preferred_element_type=f32)
        return y + b_ref[...].astype(f32)

    def layer_norm(x, g_ref, b_ref):
        mu = jnp.mean(x, axis=-1, keepdims=True)
        xc = x - mu
        var = jnp.mean(xc * xc, axis=-1, keepdims=True)
        return (xc * jax.lax.rsqrt(var + eps) * g_ref[...].astype(f32)
                + b_ref[...].astype(f32))

    def attn_block(q_all, k_all, v_all, wo_ref, bo_ref, mask_ref, is_causal):
        # q_all: (Lq, E), k_all/v_all: (Lk, E) f32.  Heads are contiguous dh-wide
        # lane slices; the head merge is fused into the output projection:
        #   out = sum_h  softmax(q_h k_h^T) v_h @ Wo[h*dh:(h+1)*dh, :]
        Lq, Lk = q_all.shape[0], k_all.shape[0]
        mask_add = mask_ref[...].astype(f32) if mask_ref is not None else None
        if is_causal:
            row = jax.lax.broadcasted_iota(jnp.int32, (Lq, Lk), 0)
            col = jax.lax.broadcasted_iota(jnp.int32, (Lq, Lk), 1)
            keep = row >= col                          # hoisted out of the head loop
        wo = wo_ref[...]                               # (E, E) bf16, loaded once
        acc = jnp.zeros((Lq, wo.shape[1]), f32)
        for h in range(nhead):                         # static unroll over heads
            sl = slice(h * dh, (h + 1) * dh)
            s = jax.lax.dot_general(                   # q_h @ k_h^T, f32
                q_all[:, sl], k_all[:, sl],
                (((1,), (1,)), ((), ())),
                preferred_element_type=f32) * scale
            if mask_add is not None:
                s = s + mask_add
            if is_causal:
                s = jnp.where(keep, s, _NEG_INF)
            m = jnp.max(s, axis=-1, keepdims=True)
            p = jnp.exp(s - m)
            denom = jnp.sum(p, axis=-1, keepdims=True)
            o = jnp.dot(p, v_all[:, sl], preferred_element_type=f32)
            o = o * pl.reciprocal(denom, approx=True)  # EUP slot, ~free vs VALU divide
            acc = acc + jnp.dot(o.astype(bf16), wo[sl, :],
                                preferred_element_type=f32)
        return acc + bo_ref[...].astype(f32)

    x = x_ref[...].astype(f32)                         # (T, E)
    mem = mem_ref[...].astype(f32)                     # (S, E)

    # ---- self-attention + residual + LayerNorm ----
    qkv = matmul(x, wqkv_ref, bqkv_ref)                # (T, 3E), one MXU pass
    a = attn_block(qkv[:, 0:E], qkv[:, E:2 * E], qkv[:, 2 * E:3 * E],
                   wo_s_ref, bo_s_ref, tmask_ref, causal)
    x = layer_norm(x + a, n1g_ref, n1b_ref)

    # ---- cross-attention + residual + LayerNorm ----
    q = matmul(x, wq_c_ref, bq_c_ref)                  # (T, E)
    kv = matmul(mem, wkv_c_ref, bkv_c_ref)             # (S, 2E), one MXU pass
    a = attn_block(q, kv[:, 0:E], kv[:, E:2 * E],
                   wo_c_ref, bo_c_ref, mmask_ref, False)
    x = layer_norm(x + a, n2g_ref, n2b_ref)

    # ---- feed-forward + residual + LayerNorm (hidden never leaves VMEM) ----
    h = jnp.maximum(matmul(x, w1_ref, b1_ref), 0.0)    # (T, F)
    y = matmul(h, w2_ref, b2_ref)                      # (T, E)
    x = layer_norm(x + y, n3g_ref, n3b_ref)

    o_ref[...] = x.astype(o_ref.dtype)


def _layernorm_kernel(x_ref, g_ref, b_ref, o_ref, *, eps):
    x = x_ref[...].astype(jnp.float32)
    mu = jnp.mean(x, axis=-1, keepdims=True)
    xc = x - mu
    var = jnp.mean(xc * xc, axis=-1, keepdims=True)
    y = xc * jax.lax.rsqrt(var + eps) * g_ref[...].astype(jnp.float32) \
        + b_ref[...].astype(jnp.float32)
    o_ref[...] = y.astype(o_ref.dtype)


# --------------------------------------------------------------------------------------
# pallas_call wrappers
# --------------------------------------------------------------------------------------

def _replicated_spec(shape):
    nd = len(shape)
    return pl.BlockSpec(shape, lambda b, _nd=nd: (0,) * _nd)


def decoder_layer_forward(x_bte, mem_bse, p, tgt_mask, memory_mask, nhead):
    """x_bte: (B, T, E), mem_bse: (B, S, E). tgt_mask: None | 'causal' | (T,T) array."""
    B, T, E = x_bte.shape
    S = mem_bse.shape[1]
    dh = E // nhead
    scale = 1.0 / float(dh) ** 0.5

    causal = isinstance(tgt_mask, str) and tgt_mask == "causal"
    tmask = None if (tgt_mask is None or causal) else tgt_mask
    mmask = memory_mask

    inputs = [x_bte, mem_bse]
    in_specs = [
        pl.BlockSpec((None, T, E), lambda b: (b, 0, 0)),
        pl.BlockSpec((None, S, E), lambda b: (b, 0, 0)),
    ]
    if tmask is not None:
        inputs.append(tmask.astype(jnp.float32))
        in_specs.append(pl.BlockSpec((T, T), lambda b: (0, 0)))
    if mmask is not None:
        inputs.append(mmask.astype(jnp.float32))
        in_specs.append(pl.BlockSpec((T, S), lambda b: (0, 0)))
    for name in _LAYER_WEIGHT_ORDER:
        arr = p[name]
        inputs.append(arr)
        in_specs.append(_replicated_spec(arr.shape))   # constant index -> VMEM-resident

    kernel = functools.partial(
        _decoder_layer_kernel, nhead=nhead, scale=scale, eps=_EPS,
        causal=causal, has_tgt_mask=tmask is not None, has_mem_mask=mmask is not None)

    return pl.pallas_call(
        kernel,
        out_shape=jax.ShapeDtypeStruct((B, T, E), x_bte.dtype),
        grid_spec=pltpu.PrefetchScalarGridSpec(
            num_scalar_prefetch=0,
            grid=(B,),
            in_specs=in_specs,
            out_specs=pl.BlockSpec((None, T, E), lambda b: (b, 0, 0)),
        ),
        compiler_params=pltpu.CompilerParams(dimension_semantics=("parallel",)),
    )(*inputs)


def layernorm(x2d, gamma, beta, eps=_EPS, row_tile=1024):
    """Row-tiled LayerNorm (no residual). x2d: (N, E); gamma/beta: (1, E)."""
    N, E = x2d.shape
    bn = row_tile if (N > row_tile and N % row_tile == 0 and row_tile % 8 == 0) else N
    return pl.pallas_call(
        functools.partial(_layernorm_kernel, eps=eps),
        out_shape=jax.ShapeDtypeStruct((N, E), x2d.dtype),
        grid_spec=pltpu.PrefetchScalarGridSpec(
            num_scalar_prefetch=0,
            grid=(N // bn,),
            in_specs=[pl.BlockSpec((bn, E), lambda i: (i, 0)),
                      pl.BlockSpec((1, E), lambda i: (0, 0)),
                      pl.BlockSpec((1, E), lambda i: (0, 0))],
            out_specs=pl.BlockSpec((bn, E), lambda i: (i, 0)),
        ),
        compiler_params=pltpu.CompilerParams(dimension_semantics=("parallel",)),
    )(x2d, gamma, beta)


def transformer_decoder1_forward(tgt, memory, layer_params, final_norm,
                                 tgt_mask, memory_mask, nhead):
    """tgt: (T, B, E), memory: (S, B, E)  (PyTorch layout)."""
    T, B, E = tgt.shape
    x = jnp.transpose(tgt, (1, 0, 2))       # (B, T, E): batch-major once for the stack
    mem = jnp.transpose(memory, (1, 0, 2))  # (B, S, E)
    for p in layer_params:
        x = decoder_layer_forward(x, mem, p, tgt_mask, memory_mask, nhead)
    if final_norm is not None:
        x = layernorm(x.reshape(B * T, E), final_norm["g"],
                      final_norm["b"]).reshape(B, T, E)
    return jnp.transpose(x, (1, 0, 2))      # back to (T, B, E)


# --------------------------------------------------------------------------------------
# Parameter init (deterministic, PyTorch-style uniform fan-in; bf16 weight storage)
# --------------------------------------------------------------------------------------

def init_decoder_layer_params(key, d_model, dim_ff, weight_dtype=jnp.bfloat16):
    E, F = d_model, dim_ff
    ks = jax.random.split(key, 20)

    def u(k, shape, fan_in):
        bound = 1.0 / (fan_in ** 0.5)
        return jax.random.uniform(k, shape, jnp.float32, -bound, bound)

    wq, wk, wv = u(ks[0], (E, E), E), u(ks[1], (E, E), E), u(ks[2], (E, E), E)
    bq, bk, bv = u(ks[3], (E,), E), u(ks[4], (E,), E), u(ks[5], (E,), E)
    wq_c, wk_c, wv_c = u(ks[6], (E, E), E), u(ks[7], (E, E), E), u(ks[8], (E, E), E)
    bq_c, bk_c, bv_c = u(ks[9], (E,), E), u(ks[10], (E,), E), u(ks[11], (E,), E)

    ones = lambda n: jnp.ones((1, n), jnp.float32)
    zeros = lambda n: jnp.zeros((1, n), jnp.float32)

    return {
        "self_wqkv": jnp.concatenate([wq, wk, wv], axis=1).astype(weight_dtype),
        "self_bqkv": jnp.concatenate([bq, bk, bv]).reshape(1, 3 * E),
        "self_wo": u(ks[12], (E, E), E).astype(weight_dtype),
        "self_bo": u(ks[13], (E,), E).reshape(1, E),
        "cross_wq": wq_c.astype(weight_dtype),
        "cross_bq": bq_c.reshape(1, E),
        "cross_wkv": jnp.concatenate([wk_c, wv_c], axis=1).astype(weight_dtype),
        "cross_bkv": jnp.concatenate([bk_c, bv_c]).reshape(1, 2 * E),
        "cross_wo": u(ks[14], (E, E), E).astype(weight_dtype),
        "cross_bo": u(ks[15], (E,), E).reshape(1, E),
        "ffn_w1": u(ks[16], (E, F), E).astype(weight_dtype),
        "ffn_b1": u(ks[17], (F,), E).reshape(1, F),
        "ffn_w2": u(ks[18], (F, E), F).astype(weight_dtype),
        "ffn_b2": u(ks[19], (E,), F).reshape(1, E),
        "norm1_g": ones(E), "norm1_b": zeros(E),
        "norm2_g": ones(E), "norm2_b": zeros(E),
        "norm3_g": ones(E), "norm3_b": zeros(E),
    }


# --------------------------------------------------------------------------------------
# Pure-JAX reference (independent composition, same bf16-operand / f32-accumulate policy)
# --------------------------------------------------------------------------------------

def _ref_ln(x, g, b, eps=_EPS):
    mu = jnp.mean(x, -1, keepdims=True)
    var = jnp.mean((x - mu) ** 2, -1, keepdims=True)
    return (x - mu) * jax.lax.rsqrt(var + eps) * g.reshape(1, 1, -1) + b.reshape(1, 1, -1)


def _ref_layer(x, mem, p, nhead, tgt_mask, memory_mask):
    T, B, E = x.shape
    dh = E // nhead
    scale = 1.0 / float(dh) ** 0.5
    f32 = jnp.float32

    def lin(a, w, b):
        y = jnp.einsum("lbe,ef->lbf", a.astype(jnp.bfloat16), w.astype(jnp.bfloat16),
                       preferred_element_type=f32)
        return y + b.astype(f32).reshape(1, 1, -1)

    def attn(q, k, v, mask, causal):
        Lq, Lk = q.shape[0], k.shape[0]
        qh = q.reshape(Lq, B, nhead, dh).transpose(1, 2, 0, 3)
        kh = k.reshape(Lk, B, nhead, dh).transpose(1, 2, 0, 3)
        vh = v.reshape(Lk, B, nhead, dh).transpose(1, 2, 0, 3)
        s = jnp.einsum("bhqd,bhkd->bhqk", qh, kh, precision=_REF_PREC) * scale
        if mask is not None:
            s = s + mask[None, None]
        if causal:
            row = jnp.arange(Lq)[:, None]
            col = jnp.arange(Lk)[None, :]
            s = jnp.where((row >= col)[None, None], s, _NEG_INF)
        pr = jax.nn.softmax(s, axis=-1)
        o = jnp.einsum("bhqk,bhkd->bhqd", pr, vh, precision=_REF_PREC)
        return o.transpose(2, 0, 1, 3).reshape(Lq, B, E)

    causal = isinstance(tgt_mask, str) and tgt_mask == "causal"
    tm = None if (tgt_mask is None or causal) else tgt_mask

    qkv = lin(x, p["self_wqkv"], p["self_bqkv"])
    a = attn(qkv[..., :E], qkv[..., E:2 * E], qkv[..., 2 * E:], tm, causal)
    a = lin(a, p["self_wo"], p["self_bo"])
    x = _ref_ln(x + a, p["norm1_g"], p["norm1_b"])

    q = lin(x, p["cross_wq"], p["cross_bq"])
    kv = lin(mem, p["cross_wkv"], p["cross_bkv"])
    a = attn(q, kv[..., :E], kv[..., E:], memory_mask, False)
    a = lin(a, p["cross_wo"], p["cross_bo"])
    x = _ref_ln(x + a, p["norm2_g"], p["norm2_b"])

    h = jnp.maximum(lin(x, p["ffn_w1"], p["ffn_b1"]), 0.0)
    y = lin(h, p["ffn_w2"], p["ffn_b2"])
    return _ref_ln(x + y, p["norm3_g"], p["norm3_b"])


def ref_decoder(tgt, memory, layer_params, final_norm, tgt_mask, memory_mask, nhead):
    out = tgt
    for p in layer_params:
        out = _ref_layer(out, memory, p, nhead, tgt_mask, memory_mask)
    if final_norm is not None:
        out = _ref_ln(out, final_norm["g"], final_norm["b"])
    return out


# --------------------------------------------------------------------------------------

if __name__ == "__main__":
    key = jax.random.PRNGKey(0)
    kt, km, kp = jax.random.split(key, 3)

    T, S, B = 8, 10, 2            # tgt length, memory length, batch
    E, H, F = 32, 4, 64           # d_model, nhead, dim_feedforward
    NUM_LAYERS = 2
    assert E % H == 0

    tgt = jax.random.normal(kt, (T, B, E), jnp.float32)
    memory = jax.random.normal(km, (S, B, E), jnp.float32)

    layer_keys = jax.random.split(kp, NUM_LAYERS)
    layer_params = [init_decoder_layer_params(k, E, F) for k in layer_keys]
    final_norm = {"g": jnp.ones((1, E), jnp.float32),
                  "b": jnp.zeros((1, E), jnp.float32)}

    @jax.jit
    def run(tgt, memory, layer_params):
        # Causal self-attn mask generated in-kernel; memory_mask=None is skipped.
        return transformer_decoder1_forward(tgt, memory, layer_params, final_norm,
                                            tgt_mask="causal", memory_mask=None,
                                            nhead=H)

    out = jax.block_until_ready(run(tgt, memory, layer_params))
    assert out.shape == (T, B, E), out.shape

    ref = ref_decoder(tgt, memory, layer_params, final_norm,
                      tgt_mask="causal", memory_mask=None, nhead=H)
    max_err = float(jnp.max(jnp.abs(out - ref)))
    assert jnp.allclose(out, ref, atol=2e-2, rtol=2e-2), f"max_err={max_err}"
    print("KERNEL_OK")
</pallas_src>

<mosaic_0001>
module attributes {stable_mosaic.version = 11 : i64} {
  func.func @_decoder_layer_kernel(%arg0: i32, %arg1: memref<1x8x32xf32, #tpu.memory_space<vmem>>, %arg2: memref<1x10x32xf32, #tpu.memory_space<vmem>>, %arg3: memref<32x96xbf16, #tpu.memory_space<vmem>>, %arg4: memref<1x96xf32, #tpu.memory_space<vmem>>, %arg5: memref<32x32xbf16, #tpu.memory_space<vmem>>, %arg6: memref<1x32xf32, #tpu.memory_space<vmem>>, %arg7: memref<1x32xf32, #tpu.memory_space<vmem>>, %arg8: memref<1x32xf32, #tpu.memory_space<vmem>>, %arg9: memref<32x32xbf16, #tpu.memory_space<vmem>>, %arg10: memref<1x32xf32, #tpu.memory_space<vmem>>, %arg11: memref<32x64xbf16, #tpu.memory_space<vmem>>, %arg12: memref<1x64xf32, #tpu.memory_space<vmem>>, %arg13: memref<32x32xbf16, #tpu.memory_space<vmem>>, %arg14: memref<1x32xf32, #tpu.memory_space<vmem>>, %arg15: memref<1x32xf32, #tpu.memory_space<vmem>>, %arg16: memref<1x32xf32, #tpu.memory_space<vmem>>, %arg17: memref<32x64xbf16, #tpu.memory_space<vmem>>, %arg18: memref<1x64xf32, #tpu.memory_space<vmem>>, %arg19: memref<64x32xbf16, #tpu.memory_space<vmem>>, %arg20: memref<1x32xf32, #tpu.memory_space<vmem>>, %arg21: memref<1x32xf32, #tpu.memory_space<vmem>>, %arg22: memref<1x32xf32, #tpu.memory_space<vmem>>, %arg23: memref<1x8x32xf32, #tpu.memory_space<vmem>>) attributes {dimension_semantics = [#tpu.dimension_semantics<parallel>], iteration_bounds = array<i64: 2>, scalar_prefetch = 0 : i64, scratch_operands = 0 : i64, tpu.core_type = #tpu.core_type<tc>, window_params = [{transform_indices = @transform_0, window_bounds = array<i64: 1, 8, 32>}, {transform_indices = @transform_1, window_bounds = array<i64: 1, 10, 32>}, {pipeline_mode = #tpu.pipeline_mode<synchronous>, transform_indices = @transform_2, window_bounds = array<i64: 32, 96>}, {pipeline_mode = #tpu.pipeline_mode<synchronous>, transform_indices = @transform_3, window_bounds = array<i64: 1, 96>}, {pipeline_mode = #tpu.pipeline_mode<synchronous>, transform_indices = @transform_4, window_bounds = array<i64: 32, 32>}, {pipeline_mode = #tpu.pipeline_mode<synchronous>, transform_indices = @transform_5, window_bounds = array<i64: 1, 32>}, {pipeline_mode = #tpu.pipeline_mode<synchronous>, transform_indices = @transform_6, window_bounds = array<i64: 1, 32>}, {pipeline_mode = #tpu.pipeline_mode<synchronous>, transform_indices = @transform_7, window_bounds = array<i64: 1, 32>}, {pipeline_mode = #tpu.pipeline_mode<synchronous>, transform_indices = @transform_8, window_bounds = array<i64: 32, 32>}, {pipeline_mode = #tpu.pipeline_mode<synchronous>, transform_indices = @transform_9, window_bounds = array<i64: 1, 32>}, {pipeline_mode = #tpu.pipeline_mode<synchronous>, transform_indices = @transform_10, window_bounds = array<i64: 32, 64>}, {pipeline_mode = #tpu.pipeline_mode<synchronous>, transform_indices = @transform_11, window_bounds = array<i64: 1, 64>}, {pipeline_mode = #tpu.pipeline_mode<synchronous>, transform_indices = @transform_12, window_bounds = array<i64: 32, 32>}, {pipeline_mode = #tpu.pipeline_mode<synchronous>, transform_indices = @transform_13, window_bounds = array<i64: 1, 32>}, {pipeline_mode = #tpu.pipeline_mode<synchronous>, transform_indices = @transform_14, window_bounds = array<i64: 1, 32>}, {pipeline_mode = #tpu.pipeline_mode<synchronous>, transform_indices = @transform_15, window_bounds = array<i64: 1, 32>}, {pipeline_mode = #tpu.pipeline_mode<synchronous>, transform_indices = @transform_16, window_bounds = array<i64: 32, 64>}, {pipeline_mode = #tpu.pipeline_mode<synchronous>, transform_indices = @transform_17, window_bounds = array<i64: 1, 64>}, {pipeline_mode = #tpu.pipeline_mode<synchronous>, transform_indices = @transform_18, window_bounds = array<i64: 64, 32>}, {pipeline_mode = #tpu.pipeline_mode<synchronous>, transform_indices = @transform_19, window_bounds = array<i64: 1, 32>}, {pipeline_mode = #tpu.pipeline_mode<synchronous>, transform_indices = @transform_20, window_bounds = array<i64: 1, 32>}, {pipeline_mode = #tpu.pipeline_mode<synchronous>, transform_indices = @transform_21, window_bounds = array<i64: 1, 32>}, {transform_indices = @transform_22, window_bounds = array<i64: 1, 8, 32>}]} {
    %c0 = arith.constant 0 : index
    %c0_0 = arith.constant 0 : index
    %c0_1 = arith.constant 0 : index
    %0 = vector.load %arg1[%c0, %c0_0, %c0_1] : memref<1x8x32xf32, #tpu.memory_space<vmem>>, vector<1x8x32xf32>
    %1 = vector.shape_cast %0 : vector<1x8x32xf32> to vector<8x32xf32>
    %c0_2 = arith.constant 0 : index
    %c0_3 = arith.constant 0 : index
    %c0_4 = arith.constant 0 : index
    %2 = vector.load %arg2[%c0_2, %c0_3, %c0_4] : memref<1x10x32xf32, #tpu.memory_space<vmem>>, vector<1x10x32xf32>
    %3 = vector.shape_cast %2 : vector<1x10x32xf32> to vector<10x32xf32>
    %4 = arith.truncf %1 : vector<8x32xf32> to vector<8x32xbf16>
    %c0_5 = arith.constant 0 : index
    %c0_6 = arith.constant 0 : index
    %5 = vector.load %arg3[%c0_5, %c0_6] : memref<32x96xbf16, #tpu.memory_space<vmem>>, vector<32x96xbf16>
    %cst = arith.constant dense<0.000000e+00> : vector<8x96xf32>
    %6 = tpu.matmul %4, %5, %cst {dimension_numbers = #tpu.dot_dimension_numbers<[1], [0], [0], [1], [0, 0, 1, 1], [], []>} : vector<8x32xbf16>, vector<32x96xbf16>, vector<8x96xf32> -> vector<8x96xf32>
    %c0_7 = arith.constant 0 : index
    %c0_8 = arith.constant 0 : index
    %7 = vector.load %arg4[%c0_7, %c0_8] : memref<1x96xf32, #tpu.memory_space<vmem>>, vector<1x96xf32>
    %8 = vector.broadcast %7 : vector<1x96xf32> to vector<8x96xf32>
    %9 = arith.addf %6, %8 : vector<8x96xf32>
    %10 = vector.extract_strided_slice %9 {offsets = [0, 0], sizes = [8, 32], strides = [1, 1]} : vector<8x96xf32> to vector<8x32xf32>
    %11 = vector.extract_strided_slice %9 {offsets = [0, 32], sizes = [8, 32], strides = [1, 1]} : vector<8x96xf32> to vector<8x32xf32>
    %12 = vector.extract_strided_slice %9 {offsets = [0, 64], sizes = [8, 32], strides = [1, 1]} : vector<8x96xf32> to vector<8x32xf32>
    %13 = tpu.iota {dimensions = array<i32: 0>} : vector<8x8xi32>
    %14 = tpu.iota {dimensions = array<i32: 1>} : vector<8x8xi32>
    %15 = arith.cmpi sge, %13, %14 : vector<8x8xi32>
    %c0_9 = arith.constant 0 : index
    %c0_10 = arith.constant 0 : index
    %16 = vector.load %arg5[%c0_9, %c0_10] : memref<32x32xbf16, #tpu.memory_space<vmem>>, vector<32x32xbf16>
    %cst_11 = arith.constant 0.000000e+00 : f32
    %17 = vector.broadcast %cst_11 : f32 to vector<8x32xf32>
    %18 = vector.extract_strided_slice %10 {offsets = [0, 0], sizes = [8, 8], strides = [1, 1]} : vector<8x32xf32> to vector<8x8xf32>
    %19 = vector.extract_strided_slice %11 {offsets = [0, 0], sizes = [8, 8], strides = [1, 1]} : vector<8x32xf32> to vector<8x8xf32>
    %cst_12 = arith.constant dense<0.000000e+00> : vector<8x8xf32>
    %20 = tpu.matmul %18, %19, %cst_12 {dimension_numbers = #tpu.dot_dimension_numbers<[1], [1], [0], [0], [0, 0, 1, 0], [], []>} : vector<8x8xf32>, vector<8x8xf32>, vector<8x8xf32> -> vector<8x8xf32>
    %cst_13 = arith.constant 0.353553385 : f32
    %21 = vector.broadcast %cst_13 : f32 to vector<8x8xf32>
    %22 = arith.mulf %20, %21 : vector<8x8xf32>
    %cst_14 = arith.constant -1.000000e+30 : f32
    %23 = vector.broadcast %cst_14 : f32 to vector<8x8xf32>
    %24 = arith.select %15, %22, %23 : vector<8x8xi1>, vector<8x8xf32>
    %cst_15 = arith.constant dense<0xFF800000> : vector<8xf32>
    %25 = vector.multi_reduction <maximumf>, %24, %cst_15 [1] : vector<8x8xf32> to vector<8xf32>
    %26 = vector.shape_cast %25 : vector<8xf32> to vector<8x1xf32>
    %27 = vector.broadcast %26 : vector<8x1xf32> to vector<8x8xf32>
    %28 = arith.subf %24, %27 : vector<8x8xf32>
    %29 = math.exp %28 : vector<8x8xf32>
    %cst_16 = arith.constant dense<0.000000e+00> : vector<8xf32>
    %30 = vector.multi_reduction <add>, %29, %cst_16 [1] : vector<8x8xf32> to vector<8xf32>
    %31 = vector.shape_cast %30 : vector<8xf32> to vector<8x1xf32>
    %32 = vector.extract_strided_slice %12 {offsets = [0, 0], sizes = [8, 8], strides = [1, 1]} : vector<8x32xf32> to vector<8x8xf32>
    %cst_17 = arith.constant dense<0.000000e+00> : vector<8x8xf32>
    %33 = tpu.matmul %29, %32, %cst_17 {dimension_numbers = #tpu.dot_dimension_numbers<[1], [0], [0], [1], [0, 0, 1, 1], [], []>} : vector<8x8xf32>, vector<8x8xf32>, vector<8x8xf32> -> vector<8x8xf32>
    %34 = tpu.reciprocal %31 {approx = true} : vector<8x1xf32> -> vector<8x1xf32>
    %35 = vector.broadcast %34 : vector<8x1xf32> to vector<8x8xf32>
    %36 = arith.mulf %33, %35 : vector<8x8xf32>
    %37 = arith.truncf %36 : vector<8x8xf32> to vector<8x8xbf16>
    %38 = vector.extract_strided_slice %16 {offsets = [0, 0], sizes = [8, 32], strides = [1, 1]} : vector<32x32xbf16> to vector<8x32xbf16>
    %cst_18 = arith.constant dense<0.000000e+00> : vector<8x32xf32>
    %39 = tpu.matmul %37, %38, %cst_18 {dimension_numbers = #tpu.dot_dimension_numbers<[1], [0], [0], [1], [0, 0, 1, 1], [], []>} : vector<8x8xbf16>, vector<8x32xbf16>, vector<8x32xf32> -> vector<8x32xf32>
    %40 = arith.addf %17, %39 : vector<8x32xf32>
    %41 = vector.extract_strided_slice %10 {offsets = [0, 8], sizes = [8, 8], strides = [1, 1]} : vector<8x32xf32> to vector<8x8xf32>
    %42 = vector.extract_strided_slice %11 {offsets = [0, 8], sizes = [8, 8], strides = [1, 1]} : vector<8x32xf32> to vector<8x8xf32>
    %cst_19 = arith.constant dense<0.000000e+00> : vector<8x8xf32>
    %43 = tpu.matmul %41, %42, %cst_19 {dimension_numbers = #tpu.dot_dimension_numbers<[1], [1], [0], [0], [0, 0, 1, 0], [], []>} : vector<8x8xf32>, vector<8x8xf32>, vector<8x8xf32> -> vector<8x8xf32>
    %cst_20 = arith.constant 0.353553385 : f32
    %44 = vector.broadcast %cst_20 : f32 to vector<8x8xf32>
    %45 = arith.mulf %43, %44 : vector<8x8xf32>
    %cst_21 = arith.constant -1.000000e+30 : f32
    %46 = vector.broadcast %cst_21 : f32 to vector<8x8xf32>
    %47 = arith.select %15, %45, %46 : vector<8x8xi1>, vector<8x8xf32>
    %cst_22 = arith.constant dense<0xFF800000> : vector<8xf32>
    %48 = vector.multi_reduction <maximumf>, %47, %cst_22 [1] : vector<8x8xf32> to vector<8xf32>
    %49 = vector.shape_cast %48 : vector<8xf32> to vector<8x1xf32>
    %50 = vector.broadcast %49 : vector<8x1xf32> to vector<8x8xf32>
    %51 = arith.subf %47, %50 : vector<8x8xf32>
    %52 = math.exp %51 : vector<8x8xf32>
    %cst_23 = arith.constant dense<0.000000e+00> : vector<8xf32>
    %53 = vector.multi_reduction <add>, %52, %cst_23 [1] : vector<8x8xf32> to vector<8xf32>
    %54 = vector.shape_cast %53 : vector<8xf32> to vector<8x1xf32>
    %55 = vector.extract_strided_slice %12 {offsets = [0, 8], sizes = [8, 8], strides = [1, 1]} : vector<8x32xf32> to vector<8x8xf32>
    %cst_24 = arith.constant dense<0.000000e+00> : vector<8x8xf32>
    %56 = tpu.matmul %52, %55, %cst_24 {dimension_numbers = #tpu.dot_dimension_numbers<[1], [0], [0], [1], [0, 0, 1, 1], [], []>} : vector<8x8xf32>, vector<8x8xf32>, vector<8x8xf32> -> vector<8x8xf32>
    %57 = tpu.reciprocal %54 {approx = true} : vector<8x1xf32> -> vector<8x1xf32>
    %58 = vector.broadcast %57 : vector<8x1xf32> to vector<8x8xf32>
    %59 = arith.mulf %56, %58 : vector<8x8xf32>
    %60 = arith.truncf %59 : vector<8x8xf32> to vector<8x8xbf16>
    %61 = vector.extract_strided_slice %16 {offsets = [8, 0], sizes = [8, 32], strides = [1, 1]} : vector<32x32xbf16> to vector<8x32xbf16>
    %cst_25 = arith.constant dense<0.000000e+00> : vector<8x32xf32>
    %62 = tpu.matmul %60, %61, %cst_25 {dimension_numbers = #tpu.dot_dimension_numbers<[1], [0], [0], [1], [0, 0, 1, 1], [], []>} : vector<8x8xbf16>, vector<8x32xbf16>, vector<8x32xf32> -> vector<8x32xf32>
    %63 = arith.addf %40, %62 : vector<8x32xf32>
    %64 = vector.extract_strided_slice %10 {offsets = [0, 16], sizes = [8, 8], strides = [1, 1]} : vector<8x32xf32> to vector<8x8xf32>
    %65 = vector.extract_strided_slice %11 {offsets = [0, 16], sizes = [8, 8], strides = [1, 1]} : vector<8x32xf32> to vector<8x8xf32>
    %cst_26 = arith.constant dense<0.000000e+00> : vector<8x8xf32>
    %66 = tpu.matmul %64, %65, %cst_26 {dimension_numbers = #tpu.dot_dimension_numbers<[1], [1], [0], [0], [0, 0, 1, 0], [], []>} : vector<8x8xf32>, vector<8x8xf32>, vector<8x8xf32> -> vector<8x8xf32>
    %cst_27 = arith.constant 0.353553385 : f32
    %67 = vector.broadcast %cst_27 : f32 to vector<8x8xf32>
    %68 = arith.mulf %66, %67 : vector<8x8xf32>
    %cst_28 = arith.constant -1.000000e+30 : f32
    %69 = vector.broadcast %cst_28 : f32 to vector<8x8xf32>
    %70 = arith.select %15, %68, %69 : vector<8x8xi1>, vector<8x8xf32>
    %cst_29 = arith.constant dense<0xFF800000> : vector<8xf32>
    %71 = vector.multi_reduction <maximumf>, %70, %cst_29 [1] : vector<8x8xf32> to vector<8xf32>
    %72 = vector.shape_cast %71 : vector<8xf32> to vector<8x1xf32>
    %73 = vector.broadcast %72 : vector<8x1xf32> to vector<8x8xf32>
    %74 = arith.subf %70, %73 : vector<8x8xf32>
    %75 = math.exp %74 : vector<8x8xf32>
    %cst_30 = arith.constant dense<0.000000e+00> : vector<8xf32>
    %76 = vector.multi_reduction <add>, %75, %cst_30 [1] : vector<8x8xf32> to vector<8xf32>
    %77 = vector.shape_cast %76 : vector<8xf32> to vector<8x1xf32>
    %78 = vector.extract_strided_slice %12 {offsets = [0, 16], sizes = [8, 8], strides = [1, 1]} : vector<8x32xf32> to vector<8x8xf32>
    %cst_31 = arith.constant dense<0.000000e+00> : vector<8x8xf32>
    %79 = tpu.matmul %75, %78, %cst_31 {dimension_numbers = #tpu.dot_dimension_numbers<[1], [0], [0], [1], [0, 0, 1, 1], [], []>} : vector<8x8xf32>, vector<8x8xf32>, vector<8x8xf32> -> vector<8x8xf32>
    %80 = tpu.reciprocal %77 {approx = true} : vector<8x1xf32> -> vector<8x1xf32>
    %81 = vector.broadcast %80 : vector<8x1xf32> to vector<8x8xf32>
    %82 = arith.mulf %79, %81 : vector<8x8xf32>
    %83 = arith.truncf %82 : vector<8x8xf32> to vector<8x8xbf16>
    %84 = vector.extract_strided_slice %16 {offsets = [16, 0], sizes = [8, 32], strides = [1, 1]} : vector<32x32xbf16> to vector<8x32xbf16>
    %cst_32 = arith.constant dense<0.000000e+00> : vector<8x32xf32>
    %85 = tpu.matmul %83, %84, %cst_32 {dimension_numbers = #tpu.dot_dimension_numbers<[1], [0], [0], [1], [0, 0, 1, 1], [], []>} : vector<8x8xbf16>, vector<8x32xbf16>, vector<8x32xf32> -> vector<8x32xf32>
    %86 = arith.addf %63, %85 : vector<8x32xf32>
    %87 = vector.extract_strided_slice %10 {offsets = [0, 24], sizes = [8, 8], strides = [1, 1]} : vector<8x32xf32> to vector<8x8xf32>
    %88 = vector.extract_strided_slice %11 {offsets = [0, 24], sizes = [8, 8], strides = [1, 1]} : vector<8x32xf32> to vector<8x8xf32>
    %cst_33 = arith.constant dense<0.000000e+00> : vector<8x8xf32>
    %89 = tpu.matmul %87, %88, %cst_33 {dimension_numbers = #tpu.dot_dimension_numbers<[1], [1], [0], [0], [0, 0, 1, 0], [], []>} : vector<8x8xf32>, vector<8x8xf32>, vector<8x8xf32> -> vector<8x8xf32>
    %cst_34 = arith.constant 0.353553385 : f32
    %90 = vector.broadcast %cst_34 : f32 to vector<8x8xf32>
    %91 = arith.mulf %89, %90 : vector<8x8xf32>
    %cst_35 = arith.constant -1.000000e+30 : f32
    %92 = vector.broadcast %cst_35 : f32 to vector<8x8xf32>
    %93 = arith.select %15, %91, %92 : vector<8x8xi1>, vector<8x8xf32>
    %cst_36 = arith.constant dense<0xFF800000> : vector<8xf32>
    %94 = vector.multi_reduction <maximumf>, %93, %cst_36 [1] : vector<8x8xf32> to vector<8xf32>
    %95 = vector.shape_cast %94 : vector<8xf32> to vector<8x1xf32>
    %96 = vector.broadcast %95 : vector<8x1xf32> to vector<8x8xf32>
    %97 = arith.subf %93, %96 : vector<8x8xf32>
    %98 = math.exp %97 : vector<8x8xf32>
    %cst_37 = arith.constant dense<0.000000e+00> : vector<8xf32>
    %99 = vector.multi_reduction <add>, %98, %cst_37 [1] : vector<8x8xf32> to vector<8xf32>
    %100 = vector.shape_cast %99 : vector<8xf32> to vector<8x1xf32>
    %101 = vector.extract_strided_slice %12 {offsets = [0, 24], sizes = [8, 8], strides = [1, 1]} : vector<8x32xf32> to vector<8x8xf32>
    %cst_38 = arith.constant dense<0.000000e+00> : vector<8x8xf32>
    %102 = tpu.matmul %98, %101, %cst_38 {dimension_numbers = #tpu.dot_dimension_numbers<[1], [0], [0], [1], [0, 0, 1, 1], [], []>} : vector<8x8xf32>, vector<8x8xf32>, vector<8x8xf32> -> vector<8x8xf32>
    %103 = tpu.reciprocal %100 {approx = true} : vector<8x1xf32> -> vector<8x1xf32>
    %104 = vector.broadcast %103 : vector<8x1xf32> to vector<8x8xf32>
    %105 = arith.mulf %102, %104 : vector<8x8xf32>
    %106 = arith.truncf %105 : vector<8x8xf32> to vector<8x8xbf16>
    %107 = vector.extract_strided_slice %16 {offsets = [24, 0], sizes = [8, 32], strides = [1, 1]} : vector<32x32xbf16> to vector<8x32xbf16>
    %cst_39 = arith.constant dense<0.000000e+00> : vector<8x32xf32>
    %108 = tpu.matmul %106, %107, %cst_39 {dimension_numbers = #tpu.dot_dimension_numbers<[1], [0], [0], [1], [0, 0, 1, 1], [], []>} : vector<8x8xbf16>, vector<8x32xbf16>, vector<8x32xf32> -> vector<8x32xf32>
    %109 = arith.addf %86, %108 : vector<8x32xf32>
    %c0_40 = arith.constant 0 : index
    %c0_41 = arith.constant 0 : index
    %110 = vector.load %arg6[%c0_40, %c0_41] : memref<1x32xf32, #tpu.memory_space<vmem>>, vector<1x32xf32>
    %111 = vector.broadcast %110 : vector<1x32xf32> to vector<8x32xf32>
    %112 = arith.addf %109, %111 : vector<8x32xf32>
    %113 = arith.addf %1, %112 : vector<8x32xf32>
    %cst_42 = arith.constant dense<0.000000e+00> : vector<8xf32>
    %114 = vector.multi_reduction <add>, %113, %cst_42 [1] : vector<8x32xf32> to vector<8xf32>
    %115 = vector.shape_cast %114 : vector<8xf32> to vector<8x1xf32>
    %cst_43 = arith.constant 3.200000e+01 : f32
    %116 = vector.broadcast %cst_43 : f32 to vector<8x1xf32>
    %117 = arith.divf %115, %116 : vector<8x1xf32>
    %118 = vector.broadcast %117 : vector<8x1xf32> to vector<8x32xf32>
    %119 = arith.subf %113, %118 : vector<8x32xf32>
    %120 = arith.mulf %119, %119 : vector<8x32xf32>
    %cst_44 = arith.constant dense<0.000000e+00> : vector<8xf32>
    %121 = vector.multi_reduction <add>, %120, %cst_44 [1] : vector<8x32xf32> to vector<8xf32>
    %122 = vector.shape_cast %121 : vector<8xf32> to vector<8x1xf32>
    %cst_45 = arith.constant 3.200000e+01 : f32
    %123 = vector.broadcast %cst_45 : f32 to vector<8x1xf32>
    %124 = arith.divf %122, %123 : vector<8x1xf32>
    %cst_46 = arith.constant 9.99999974E-6 : f32
    %125 = vector.broadcast %cst_46 : f32 to vector<8x1xf32>
    %126 = arith.addf %124, %125 : vector<8x1xf32>
    %127 = math.rsqrt %126 : vector<8x1xf32>
    %128 = vector.broadcast %127 : vector<8x1xf32> to vector<8x32xf32>
    %129 = arith.mulf %119, %128 : vector<8x32xf32>
    %c0_47 = arith.constant 0 : index
    %c0_48 = arith.constant 0 : index
    %130 = vector.load %arg7[%c0_47, %c0_48] : memref<1x32xf32, #tpu.memory_space<vmem>>, vector<1x32xf32>
    %131 = vector.broadcast %130 : vector<1x32xf32> to vector<8x32xf32>
    %132 = arith.mulf %129, %131 : vector<8x32xf32>
    %c0_49 = arith.constant 0 : index
    %c0_50 = arith.constant 0 : index
    %133 = vector.load %arg8[%c0_49, %c0_50] : memref<1x32xf32, #tpu.memory_space<vmem>>, vector<1x32xf32>
    %134 = vector.broadcast %133 : vector<1x32xf32> to vector<8x32xf32>
    %135 = arith.addf %132, %134 : vector<8x32xf32>
    %136 = arith.truncf %135 : vector<8x32xf32> to vector<8x32xbf16>
    %c0_51 = arith.constant 0 : index
    %c0_52 = arith.constant 0 : index
    %137 = vector.load %arg9[%c0_51, %c0_52] : memref<32x32xbf16, #tpu.memory_space<vmem>>, vector<32x32xbf16>
    %cst_53 = arith.constant dense<0.000000e+00> : vector<8x32xf32>
    %138 = tpu.matmul %136, %137, %cst_53 {dimension_numbers = #tpu.dot_dimension_numbers<[1], [0], [0], [1], [0, 0, 1, 1], [], []>} : vector<8x32xbf16>, vector<32x32xbf16>, vector<8x32xf32> -> vector<8x32xf32>
    %c0_54 = arith.constant 0 : index
    %c0_55 = arith.constant 0 : index
    %139 = vector.load %arg10[%c0_54, %c0_55] : memref<1x32xf32, #tpu.memory_space<vmem>>, vector<1x32xf32>
    %140 = vector.broadcast %139 : vector<1x32xf32> to vector<8x32xf32>
    %141 = arith.addf %138, %140 : vector<8x32xf32>
    %142 = arith.truncf %3 : vector<10x32xf32> to vector<10x32xbf16>
    %c0_56 = arith.constant 0 : index
    %c0_57 = arith.constant 0 : index
    %143 = vector.load %arg11[%c0_56, %c0_57] : memref<32x64xbf16, #tpu.memory_space<vmem>>, vector<32x64xbf16>
    %cst_58 = arith.constant dense<0.000000e+00> : vector<10x64xf32>
    %144 = tpu.matmul %142, %143, %cst_58 {dimension_numbers = #tpu.dot_dimension_numbers<[1], [0], [0], [1], [0, 0, 1, 1], [], []>} : vector<10x32xbf16>, vector<32x64xbf16>, vector<10x64xf32> -> vector<10x64xf32>
    %c0_59 = arith.constant 0 : index
    %c0_60 = arith.constant 0 : index
    %145 = vector.load %arg12[%c0_59, %c0_60] : memref<1x64xf32, #tpu.memory_space<vmem>>, vector<1x64xf32>
    %146 = vector.broadcast %145 : vector<1x64xf32> to vector<10x64xf32>
    %147 = arith.addf %144, %146 : vector<10x64xf32>
    %148 = vector.extract_strided_slice %147 {offsets = [0, 0], sizes = [10, 32], strides = [1, 1]} : vector<10x64xf32> to vector<10x32xf32>
    %149 = vector.extract_strided_slice %147 {offsets = [0, 32], sizes = [10, 32], strides = [1, 1]} : vector<10x64xf32> to vector<10x32xf32>
    %c0_61 = arith.constant 0 : index
    %c0_62 = arith.constant 0 : index
    %150 = vector.load %arg13[%c0_61, %c0_62] : memref<32x32xbf16, #tpu.memory_space<vmem>>, vector<32x32xbf16>
    %cst_63 = arith.constant 0.000000e+00 : f32
    %151 = vector.broadcast %cst_63 : f32 to vector<8x32xf32>
    %152 = vector.extract_strided_slice %141 {offsets = [0, 0], sizes = [8, 8], strides = [1, 1]} : vector<8x32xf32> to vector<8x8xf32>
    %153 = vector.extract_strided_slice %148 {offsets = [0, 0], sizes = [10, 8], strides = [1, 1]} : vector<10x32xf32> to vector<10x8xf32>
    %cst_64 = arith.constant dense<0.000000e+00> : vector<8x10xf32>
    %154 = tpu.matmul %152, %153, %cst_64 {dimension_numbers = #tpu.dot_dimension_numbers<[1], [1], [0], [0], [0, 0, 1, 0], [], []>} : vector<8x8xf32>, vector<10x8xf32>, vector<8x10xf32> -> vector<8x10xf32>
    %cst_65 = arith.constant 0.353553385 : f32
    %155 = vector.broadcast %cst_65 : f32 to vector<8x10xf32>
    %156 = arith.mulf %154, %155 : vector<8x10xf32>
    %cst_66 = arith.constant dense<0xFF800000> : vector<8xf32>
    %157 = vector.multi_reduction <maximumf>, %156, %cst_66 [1] : vector<8x10xf32> to vector<8xf32>
    %158 = vector.shape_cast %157 : vector<8xf32> to vector<8x1xf32>
    %159 = vector.broadcast %158 : vector<8x1xf32> to vector<8x10xf32>
    %160 = arith.subf %156, %159 : vector<8x10xf32>
    %161 = math.exp %160 : vector<8x10xf32>
    %cst_67 = arith.constant dense<0.000000e+00> : vector<8xf32>
    %162 = vector.multi_reduction <add>, %161, %cst_67 [1] : vector<8x10xf32> to vector<8xf32>
    %163 = vector.shape_cast %162 : vector<8xf32> to vector<8x1xf32>
    %164 = vector.extract_strided_slice %149 {offsets = [0, 0], sizes = [10, 8], strides = [1, 1]} : vector<10x32xf32> to vector<10x8xf32>
    %cst_68 = arith.constant dense<0.000000e+00> : vector<8x8xf32>
    %165 = tpu.matmul %161, %164, %cst_68 {dimension_numbers = #tpu.dot_dimension_numbers<[1], [0], [0], [1], [0, 0, 1, 1], [], []>} : vector<8x10xf32>, vector<10x8xf32>, vector<8x8xf32> -> vector<8x8xf32>
    %166 = tpu.reciprocal %163 {approx = true} : vector<8x1xf32> -> vector<8x1xf32>
    %167 = vector.broadcast %166 : vector<8x1xf32> to vector<8x8xf32>
    %168 = arith.mulf %165, %167 : vector<8x8xf32>
    %169 = arith.truncf %168 : vector<8x8xf32> to vector<8x8xbf16>
    %170 = vector.extract_strided_slice %150 {offsets = [0, 0], sizes = [8, 32], strides = [1, 1]} : vector<32x32xbf16> to vector<8x32xbf16>
    %cst_69 = arith.constant dense<0.000000e+00> : vector<8x32xf32>
    %171 = tpu.matmul %169, %170, %cst_69 {dimension_numbers = #tpu.dot_dimension_numbers<[1], [0], [0], [1], [0, 0, 1, 1], [], []>} : vector<8x8xbf16>, vector<8x32xbf16>, vector<8x32xf32> -> vector<8x32xf32>
    %172 = arith.addf %151, %171 : vector<8x32xf32>
    %173 = vector.extract_strided_slice %141 {offsets = [0, 8], sizes = [8, 8], strides = [1, 1]} : vector<8x32xf32> to vector<8x8xf32>
    %174 = vector.extract_strided_slice %148 {offsets = [0, 8], sizes = [10, 8], strides = [1, 1]} : vector<10x32xf32> to vector<10x8xf32>
    %cst_70 = arith.constant dense<0.000000e+00> : vector<8x10xf32>
    %175 = tpu.matmul %173, %174, %cst_70 {dimension_numbers = #tpu.dot_dimension_numbers<[1], [1], [0], [0], [0, 0, 1, 0], [], []>} : vector<8x8xf32>, vector<10x8xf32>, vector<8x10xf32> -> vector<8x10xf32>
    %cst_71 = arith.constant 0.353553385 : f32
    %176 = vector.broadcast %cst_71 : f32 to vector<8x10xf32>
    %177 = arith.mulf %175, %176 : vector<8x10xf32>
    %cst_72 = arith.constant dense<0xFF800000> : vector<8xf32>
    %178 = vector.multi_reduction <maximumf>, %177, %cst_72 [1] : vector<8x10xf32> to vector<8xf32>
    %179 = vector.shape_cast %178 : vector<8xf32> to vector<8x1xf32>
    %180 = vector.broadcast %179 : vector<8x1xf32> to vector<8x10xf32>
    %181 = arith.subf %177, %180 : vector<8x10xf32>
    %182 = math.exp %181 : vector<8x10xf32>
    %cst_73 = arith.constant dense<0.000000e+00> : vector<8xf32>
    %183 = vector.multi_reduction <add>, %182, %cst_73 [1] : vector<8x10xf32> to vector<8xf32>
    %184 = vector.shape_cast %183 : vector<8xf32> to vector<8x1xf32>
    %185 = vector.extract_strided_slice %149 {offsets = [0, 8], sizes = [10, 8], strides = [1, 1]} : vector<10x32xf32> to vector<10x8xf32>
    %cst_74 = arith.constant dense<0.000000e+00> : vector<8x8xf32>
    %186 = tpu.matmul %182, %185, %cst_74 {dimension_numbers = #tpu.dot_dimension_numbers<[1], [0], [0], [1], [0, 0, 1, 1], [], []>} : vector<8x10xf32>, vector<10x8xf32>, vector<8x8xf32> -> vector<8x8xf32>
    %187 = tpu.reciprocal %184 {approx = true} : vector<8x1xf32> -> vector<8x1xf32>
    %188 = vector.broadcast %187 : vector<8x1xf32> to vector<8x8xf32>
    %189 = arith.mulf %186, %188 : vector<8x8xf32>
    %190 = arith.truncf %189 : vector<8x8xf32> to vector<8x8xbf16>
    %191 = vector.extract_strided_slice %150 {offsets = [8, 0], sizes = [8, 32], strides = [1, 1]} : vector<32x32xbf16> to vector<8x32xbf16>
    %cst_75 = arith.constant dense<0.000000e+00> : vector<8x32xf32>
    %192 = tpu.matmul %190, %191, %cst_75 {dimension_numbers = #tpu.dot_dimension_numbers<[1], [0], [0], [1], [0, 0, 1, 1], [], []>} : vector<8x8xbf16>, vector<8x32xbf16>, vector<8x32xf32> -> vector<8x32xf32>
    %193 = arith.addf %172, %192 : vector<8x32xf32>
    %194 = vector.extract_strided_slice %141 {offsets = [0, 16], sizes = [8, 8], strides = [1, 1]} : vector<8x32xf32> to vector<8x8xf32>
    %195 = vector.extract_strided_slice %148 {offsets = [0, 16], sizes = [10, 8], strides = [1, 1]} : vector<10x32xf32> to vector<10x8xf32>
    %cst_76 = arith.constant dense<0.000000e+00> : vector<8x10xf32>
    %196 = tpu.matmul %194, %195, %cst_76 {dimension_numbers = #tpu.dot_dimension_numbers<[1], [1], [0], [0], [0, 0, 1, 0], [], []>} : vector<8x8xf32>, vector<10x8xf32>, vector<8x10xf32> -> vector<8x10xf32>
    %cst_77 = arith.constant 0.353553385 : f32
    %197 = vector.broadcast %cst_77 : f32 to vector<8x10xf32>
    %198 = arith.mulf %196, %197 : vector<8x10xf32>
    %cst_78 = arith.constant dense<0xFF800000> : vector<8xf32>
    %199 = vector.multi_reduction <maximumf>, %198, %cst_78 [1] : vector<8x10xf32> to vector<8xf32>
    %200 = vector.shape_cast %199 : vector<8xf32> to vector<8x1xf32>
    %201 = vector.broadcast %200 : vector<8x1xf32> to vector<8x10xf32>
    %202 = arith.subf %198, %201 : vector<8x10xf32>
    %203 = math.exp %202 : vector<8x10xf32>
    %cst_79 = arith.constant dense<0.000000e+00> : vector<8xf32>
    %204 = vector.multi_reduction <add>, %203, %cst_79 [1] : vector<8x10xf32> to vector<8xf32>
    %205 = vector.shape_cast %204 : vector<8xf32> to vector<8x1xf32>
    %206 = vector.extract_strided_slice %149 {offsets = [0, 16], sizes = [10, 8], strides = [1, 1]} : vector<10x32xf32> to vector<10x8xf32>
    %cst_80 = arith.constant dense<0.000000e+00> : vector<8x8xf32>
    %207 = tpu.matmul %203, %206, %cst_80 {dimension_numbers = #tpu.dot_dimension_numbers<[1], [0], [0], [1], [0, 0, 1, 1], [], []>} : vector<8x10xf32>, vector<10x8xf32>, vector<8x8xf32> -> vector<8x8xf32>
    %208 = tpu.reciprocal %205 {approx = true} : vector<8x1xf32> -> vector<8x1xf32>
    %209 = vector.broadcast %208 : vector<8x1xf32> to vector<8x8xf32>
    %210 = arith.mulf %207, %209 : vector<8x8xf32>
    %211 = arith.truncf %210 : vector<8x8xf32> to vector<8x8xbf16>
    %212 = vector.extract_strided_slice %150 {offsets = [16, 0], sizes = [8, 32], strides = [1, 1]} : vector<32x32xbf16> to vector<8x32xbf16>
    %cst_81 = arith.constant dense<0.000000e+00> : vector<8x32xf32>
    %213 = tpu.matmul %211, %212, %cst_81 {dimension_numbers = #tpu.dot_dimension_numbers<[1], [0], [0], [1], [0, 0, 1, 1], [], []>} : vector<8x8xbf16>, vector<8x32xbf16>, vector<8x32xf32> -> vector<8x32xf32>
    %214 = arith.addf %193, %213 : vector<8x32xf32>
    %215 = vector.extract_strided_slice %141 {offsets = [0, 24], sizes = [8, 8], strides = [1, 1]} : vector<8x32xf32> to vector<8x8xf32>
    %216 = vector.extract_strided_slice %148 {offsets = [0, 24], sizes = [10, 8], strides = [1, 1]} : vector<10x32xf32> to vector<10x8xf32>
    %cst_82 = arith.constant dense<0.000000e+00> : vector<8x10xf32>
    %217 = tpu.matmul %215, %216, %cst_82 {dimension_numbers = #tpu.dot_dimension_numbers<[1], [1], [0], [0], [0, 0, 1, 0], [], []>} : vector<8x8xf32>, vector<10x8xf32>, vector<8x10xf32> -> vector<8x10xf32>
    %cst_83 = arith.constant 0.353553385 : f32
    %218 = vector.broadcast %cst_83 : f32 to vector<8x10xf32>
    %219 = arith.mulf %217, %218 : vector<8x10xf32>
    %cst_84 = arith.constant dense<0xFF800000> : vector<8xf32>
    %220 = vector.multi_reduction <maximumf>, %219, %cst_84 [1] : vector<8x10xf32> to vector<8xf32>
    %221 = vector.shape_cast %220 : vector<8xf32> to vector<8x1xf32>
    %222 = vector.broadcast %221 : vector<8x1xf32> to vector<8x10xf32>
    %223 = arith.subf %219, %222 : vector<8x10xf32>
    %224 = math.exp %223 : vector<8x10xf32>
    %cst_85 = arith.constant dense<0.000000e+00> : vector<8xf32>
    %225 = vector.multi_reduction <add>, %224, %cst_85 [1] : vector<8x10xf32> to vector<8xf32>
    %226 = vector.shape_cast %225 : vector<8xf32> to vector<8x1xf32>
    %227 = vector.extract_strided_slice %149 {offsets = [0, 24], sizes = [10, 8], strides = [1, 1]} : vector<10x32xf32> to vector<10x8xf32>
    %cst_86 = arith.constant dense<0.000000e+00> : vector<8x8xf32>
    %228 = tpu.matmul %224, %227, %cst_86 {dimension_numbers = #tpu.dot_dimension_numbers<[1], [0], [0], [1], [0, 0, 1, 1], [], []>} : vector<8x10xf32>, vector<10x8xf32>, vector<8x8xf32> -> vector<8x8xf32>
    %229 = tpu.reciprocal %226 {approx = true} : vector<8x1xf32> -> vector<8x1xf32>
    %230 = vector.broadcast %229 : vector<8x1xf32> to vector<8x8xf32>
    %231 = arith.mulf %228, %230 : vector<8x8xf32>
    %232 = arith.truncf %231 : vector<8x8xf32> to vector<8x8xbf16>
    %233 = vector.extract_strided_slice %150 {offsets = [24, 0], sizes = [8, 32], strides = [1, 1]} : vector<32x32xbf16> to vector<8x32xbf16>
    %cst_87 = arith.constant dense<0.000000e+00> : vector<8x32xf32>
    %234 = tpu.matmul %232, %233, %cst_87 {dimension_numbers = #tpu.dot_dimension_numbers<[1], [0], [0], [1], [0, 0, 1, 1], [], []>} : vector<8x8xbf16>, vector<8x32xbf16>, vector<8x32xf32> -> vector<8x32xf32>
    %235 = arith.addf %214, %234 : vector<8x32xf32>
    %c0_88 = arith.constant 0 : index
    %c0_89 = arith.constant 0 : index
    %236 = vector.load %arg14[%c0_88, %c0_89] : memref<1x32xf32, #tpu.memory_space<vmem>>, vector<1x32xf32>
    %237 = vector.broadcast %236 : vector<1x32xf32> to vector<8x32xf32>
    %238 = arith.addf %235, %237 : vector<8x32xf32>
    %239 = arith.addf %135, %238 : vector<8x32xf32>
    %cst_90 = arith.constant dense<0.000000e+00> : vector<8xf32>
    %240 = vector.multi_reduction <add>, %239, %cst_90 [1] : vector<8x32xf32> to vector<8xf32>
    %241 = vector.shape_cast %240 : vector<8xf32> to vector<8x1xf32>
    %cst_91 = arith.constant 3.200000e+01 : f32
    %242 = vector.broadcast %cst_91 : f32 to vector<8x1xf32>
    %243 = arith.divf %241, %242 : vector<8x1xf32>
    %244 = vector.broadcast %243 : vector<8x1xf32> to vector<8x32xf32>
    %245 = arith.subf %239, %244 : vector<8x32xf32>
    %246 = arith.mulf %245, %245 : vector<8x32xf32>
    %cst_92 = arith.constant dense<0.000000e+00> : vector<8xf32>
    %247 = vector.multi_reduction <add>, %246, %cst_92 [1] : vector<8x32xf32> to vector<8xf32>
    %248 = vector.shape_cast %247 : vector<8xf32> to vector<8x1xf32>
    %cst_93 = arith.constant 3.200000e+01 : f32
    %249 = vector.broadcast %cst_93 : f32 to vector<8x1xf32>
    %250 = arith.divf %248, %249 : vector<8x1xf32>
    %cst_94 = arith.constant 9.99999974E-6 : f32
    %251 = vector.broadcast %cst_94 : f32 to vector<8x1xf32>
    %252 = arith.addf %250, %251 : vector<8x1xf32>
    %253 = math.rsqrt %252 : vector<8x1xf32>
    %254 = vector.broadcast %253 : vector<8x1xf32> to vector<8x32xf32>
    %255 = arith.mulf %245, %254 : vector<8x32xf32>
    %c0_95 = arith.constant 0 : index
    %c0_96 = arith.constant 0 : index
    %256 = vector.load %arg15[%c0_95, %c0_96] : memref<1x32xf32, #tpu.memory_space<vmem>>, vector<1x32xf32>
    %257 = vector.broadcast %256 : vector<1x32xf32> to vector<8x32xf32>
    %258 = arith.mulf %255, %257 : vector<8x32xf32>
    %c0_97 = arith.constant 0 : index
    %c0_98 = arith.constant 0 : index
    %259 = vector.load %arg16[%c0_97, %c0_98] : memref<1x32xf32, #tpu.memory_space<vmem>>, vector<1x32xf32>
    %260 = vector.broadcast %259 : vector<1x32xf32> to vector<8x32xf32>
    %261 = arith.addf %258, %260 : vector<8x32xf32>
    %262 = arith.truncf %261 : vector<8x32xf32> to vector<8x32xbf16>
    %c0_99 = arith.constant 0 : index
    %c0_100 = arith.constant 0 : index
    %263 = vector.load %arg17[%c0_99, %c0_100] : memref<32x64xbf16, #tpu.memory_space<vmem>>, vector<32x64xbf16>
    %cst_101 = arith.constant dense<0.000000e+00> : vector<8x64xf32>
    %264 = tpu.matmul %262, %263, %cst_101 {dimension_numbers = #tpu.dot_dimension_numbers<[1], [0], [0], [1], [0, 0, 1, 1], [], []>} : vector<8x32xbf16>, vector<32x64xbf16>, vector<8x64xf32> -> vector<8x64xf32>
    %c0_102 = arith.constant 0 : index
    %c0_103 = arith.constant 0 : index
    %265 = vector.load %arg18[%c0_102, %c0_103] : memref<1x64xf32, #tpu.memory_space<vmem>>, vector<1x64xf32>
    %266 = vector.broadcast %265 : vector<1x64xf32> to vector<8x64xf32>
    %267 = arith.addf %264, %266 : vector<8x64xf32>
    %cst_104 = arith.constant 0.000000e+00 : f32
    %268 = vector.broadcast %cst_104 : f32 to vector<8x64xf32>
    %269 = arith.maximumf %267, %268 : vector<8x64xf32>
    %270 = arith.truncf %269 : vector<8x64xf32> to vector<8x64xbf16>
    %c0_105 = arith.constant 0 : index
    %c0_106 = arith.constant 0 : index
    %271 = vector.load %arg19[%c0_105, %c0_106] : memref<64x32xbf16, #tpu.memory_space<vmem>>, vector<64x32xbf16>
    %cst_107 = arith.constant dense<0.000000e+00> : vector<8x32xf32>
    %272 = tpu.matmul %270, %271, %cst_107 {dimension_numbers = #tpu.dot_dimension_numbers<[1], [0], [0], [1], [0, 0, 1, 1], [], []>} : vector<8x64xbf16>, vector<64x32xbf16>, vector<8x32xf32> -> vector<8x32xf32>
    %c0_108 = arith.constant 0 : index
    %c0_109 = arith.constant 0 : index
    %273 = vector.load %arg20[%c0_108, %c0_109] : memref<1x32xf32, #tpu.memory_space<vmem>>, vector<1x32xf32>
    %274 = vector.broadcast %273 : vector<1x32xf32> to vector<8x32xf32>
    %275 = arith.addf %272, %274 : vector<8x32xf32>
    %276 = arith.addf %261, %275 : vector<8x32xf32>
    %cst_110 = arith.constant dense<0.000000e+00> : vector<8xf32>
    %277 = vector.multi_reduction <add>, %276, %cst_110 [1] : vector<8x32xf32> to vector<8xf32>
    %278 = vector.shape_cast %277 : vector<8xf32> to vector<8x1xf32>
    %cst_111 = arith.constant 3.200000e+01 : f32
    %279 = vector.broadcast %cst_111 : f32 to vector<8x1xf32>
    %280 = arith.divf %278, %279 : vector<8x1xf32>
    %281 = vector.broadcast %280 : vector<8x1xf32> to vector<8x32xf32>
    %282 = arith.subf %276, %281 : vector<8x32xf32>
    %283 = arith.mulf %282, %282 : vector<8x32xf32>
    %cst_112 = arith.constant dense<0.000000e+00> : vector<8xf32>
    %284 = vector.multi_reduction <add>, %283, %cst_112 [1] : vector<8x32xf32> to vector<8xf32>
    %285 = vector.shape_cast %284 : vector<8xf32> to vector<8x1xf32>
    %cst_113 = arith.constant 3.200000e+01 : f32
    %286 = vector.broadcast %cst_113 : f32 to vector<8x1xf32>
    %287 = arith.divf %285, %286 : vector<8x1xf32>
    %cst_114 = arith.constant 9.99999974E-6 : f32
    %288 = vector.broadcast %cst_114 : f32 to vector<8x1xf32>
    %289 = arith.addf %287, %288 : vector<8x1xf32>
    %290 = math.rsqrt %289 : vector<8x1xf32>
    %291 = vector.broadcast %290 : vector<8x1xf32> to vector<8x32xf32>
    %292 = arith.mulf %282, %291 : vector<8x32xf32>
    %c0_115 = arith.constant 0 : index
    %c0_116 = arith.constant 0 : index
    %293 = vector.load %arg21[%c0_115, %c0_116] : memref<1x32xf32, #tpu.memory_space<vmem>>, vector<1x32xf32>
    %294 = vector.broadcast %293 : vector<1x32xf32> to vector<8x32xf32>
    %295 = arith.mulf %292, %294 : vector<8x32xf32>
    %c0_117 = arith.constant 0 : index
    %c0_118 = arith.constant 0 : index
    %296 = vector.load %arg22[%c0_117, %c0_118] : memref<1x32xf32, #tpu.memory_space<vmem>>, vector<1x32xf32>
    %297 = vector.broadcast %296 : vector<1x32xf32> to vector<8x32xf32>
    %298 = arith.addf %295, %297 : vector<8x32xf32>
    %c0_119 = arith.constant 0 : index
    %c0_120 = arith.constant 0 : index
    %c0_121 = arith.constant 0 : index
    %299 = vector.load %arg23[%c0_119, %c0_120, %c0_121] : memref<1x8x32xf32, #tpu.memory_space<vmem>>, vector<1x8x32xf32>
    %300 = vector.shape_cast %299 : vector<1x8x32xf32> to vector<8x32xf32>
    %301 = vector.shape_cast %298 : vector<8x32xf32> to vector<1x8x32xf32>
    tpu.vector_store %arg23[%c0_119, %c0_120, %c0_121], %301 {strides = array<i32>} : memref<1x8x32xf32, #tpu.memory_space<vmem>>, vector<1x8x32xf32>,
    return
  }
  func.func @transform_0(%arg0: i32) -> (i32, i32, i32) {
    %c0_i32 = arith.constant 0 : i32
    %c0_i32_0 = arith.constant 0 : i32
    %c0_i32_1 = arith.constant 0 : i32
    return %arg0, %c0_i32, %c0_i32_0 : i32, i32, i32
  }
  func.func @transform_1(%arg0: i32) -> (i32, i32, i32) {
    %c0_i32 = arith.constant 0 : i32
    %c0_i32_0 = arith.constant 0 : i32
    %c0_i32_1 = arith.constant 0 : i32
    return %arg0, %c0_i32, %c0_i32_0 : i32, i32, i32
  }
  func.func @transform_2(%arg0: i32) -> (i32, i32) {
    %c0_i32 = arith.constant 0 : i32
    %c0_i32_0 = arith.constant 0 : i32
    %c0_i32_1 = arith.constant 0 : i32
    return %c0_i32, %c0_i32_0 : i32, i32
  }
  func.func @transform_3(%arg0: i32) -> (i32, i32) {
    %c0_i32 = arith.constant 0 : i32
    %c0_i32_0 = arith.constant 0 : i32
    %c0_i32_1 = arith.constant 0 : i32
    return %c0_i32, %c0_i32_0 : i32, i32
  }
  func.func @transform_4(%arg0: i32) -> (i32, i32) {
    %c0_i32 = arith.constant 0 : i32
    %c0_i32_0 = arith.constant 0 : i32
    %c0_i32_1 = arith.constant 0 : i32
    return %c0_i32, %c0_i32_0 : i32, i32
  }
  func.func @transform_5(%arg0: i32) -> (i32, i32) {
    %c0_i32 = arith.constant 0 : i32
    %c0_i32_0 = arith.constant 0 : i32
    %c0_i32_1 = arith.constant 0 : i32
    return %c0_i32, %c0_i32_0 : i32, i32
  }
  func.func @transform_6(%arg0: i32) -> (i32, i32) {
    %c0_i32 = arith.constant 0 : i32
    %c0_i32_0 = arith.constant 0 : i32
    %c0_i32_1 = arith.constant 0 : i32
    return %c0_i32, %c0_i32_0 : i32, i32
  }
  func.func @transform_7(%arg0: i32) -> (i32, i32) {
    %c0_i32 = arith.constant 0 : i32
    %c0_i32_0 = arith.constant 0 : i32
    %c0_i32_1 = arith.constant 0 : i32
    return %c0_i32, %c0_i32_0 : i32, i32
  }
  func.func @transform_8(%arg0: i32) -> (i32, i32) {
    %c0_i32 = arith.constant 0 : i32
    %c0_i32_0 = arith.constant 0 : i32
    %c0_i32_1 = arith.constant 0 : i32
    return %c0_i32, %c0_i32_0 : i32, i32
  }
  func.func @transform_9(%arg0: i32) -> (i32, i32) {
    %c0_i32 = arith.constant 0 : i32
    %c0_i32_0 = arith.constant 0 : i32
    %c0_i32_1 = arith.constant 0 : i32
    return %c0_i32, %c0_i32_0 : i32, i32
  }
  func.func @transform_10(%arg0: i32) -> (i32, i32) {
    %c0_i32 = arith.constant 0 : i32
    %c0_i32_0 = arith.constant 0 : i32
    %c0_i32_1 = arith.constant 0 : i32
    return %c0_i32, %c0_i32_0 : i32, i32
  }
  func.func @transform_11(%arg0: i32) -> (i32, i32) {
    %c0_i32 = arith.constant 0 : i32
    %c0_i32_0 = arith.constant 0 : i32
    %c0_i32_1 = arith.constant 0 : i32
    return %c0_i32, %c0_i32_0 : i32, i32
  }
  func.func @transform_12(%arg0: i32) -> (i32, i32) {
    %c0_i32 = arith.constant 0 : i32
    %c0_i32_0 = arith.constant 0 : i32
    %c0_i32_1 = arith.constant 0 : i32
    return %c0_i32, %c0_i32_0 : i32, i32
  }
  func.func @transform_13(%arg0: i32) -> (i32, i32) {
    %c0_i32 = arith.constant 0 : i32
    %c0_i32_0 = arith.constant 0 : i32
    %c0_i32_1 = arith.constant 0 : i32
    return %c0_i32, %c0_i32_0 : i32, i32
  }
  func.func @transform_14(%arg0: i32) -> (i32, i32) {
    %c0_i32 = arith.constant 0 : i32
    %c0_i32_0 = arith.constant 0 : i32
    %c0_i32_1 = arith.constant 0 : i32
    return %c0_i32, %c0_i32_0 : i32, i32
  }
  func.func @transform_15(%arg0: i32) -> (i32, i32) {
    %c0_i32 = arith.constant 0 : i32
    %c0_i32_0 = arith.constant 0 : i32
    %c0_i32_1 = arith.constant 0 : i32
    return %c0_i32, %c0_i32_0 : i32, i32
  }
  func.func @transform_16(%arg0: i32) -> (i32, i32) {
    %c0_i32 = arith.constant 0 : i32
    %c0_i32_0 = arith.constant 0 : i32
    %c0_i32_1 = arith.constant 0 : i32
    return %c0_i32, %c0_i32_0 : i32, i32
  }
  func.func @transform_17(%arg0: i32) -> (i32, i32) {
    %c0_i32 = arith.constant 0 : i32
    %c0_i32_0 = arith.constant 0 : i32
    %c0_i32_1 = arith.constant 0 : i32
    return %c0_i32, %c0_i32_0 : i32, i32
  }
  func.func @transform_18(%arg0: i32) -> (i32, i32) {
    %c0_i32 = arith.constant 0 : i32
    %c0_i32_0 = arith.constant 0 : i32
    %c0_i32_1 = arith.constant 0 : i32
    return %c0_i32, %c0_i32_0 : i32, i32
  }
  func.func @transform_19(%arg0: i32) -> (i32, i32) {
    %c0_i32 = arith.constant 0 : i32
    %c0_i32_0 = arith.constant 0 : i32
    %c0_i32_1 = arith.constant 0 : i32
    return %c0_i32, %c0_i32_0 : i32, i32
  }
  func.func @transform_20(%arg0: i32) -> (i32, i32) {
    %c0_i32 = arith.constant 0 : i32
    %c0_i32_0 = arith.constant 0 : i32
    %c0_i32_1 = arith.constant 0 : i32
    return %c0_i32, %c0_i32_0 : i32, i32
  }
  func.func @transform_21(%arg0: i32) -> (i32, i32) {
    %c0_i32 = arith.constant 0 : i32
    %c0_i32_0 = arith.constant 0 : i32
    %c0_i32_1 = arith.constant 0 : i32
    return %c0_i32, %c0_i32_0 : i32, i32
  }
  func.func @transform_22(%arg0: i32) -> (i32, i32, i32) {
    %c0_i32 = arith.constant 0 : i32
    %c0_i32_0 = arith.constant 0 : i32
    %c0_i32_1 = arith.constant 0 : i32
    return %arg0, %c0_i32, %c0_i32_0 : i32, i32, i32
  }
}

module attributes {stable_mosaic.version = 11 : i64} {
  func.func @_layernorm_kernel(%arg0: i32, %arg1: memref<16x32xf32, #tpu.memory_space<vmem>>, %arg2: memref<1x32xf32, #tpu.memory_space<vmem>>, %arg3: memref<1x32xf32, #tpu.memory_space<vmem>>, %arg4: memref<16x32xf32, #tpu.memory_space<vmem>>) attributes {dimension_semantics = [#tpu.dimension_semantics<parallel>], iteration_bounds = array<i64: 1>, scalar_prefetch = 0 : i64, scratch_operands = 0 : i64, tpu.core_type = #tpu.core_type<tc>, window_params = [{transform_indices = @transform_0, window_bounds = array<i64: 16, 32>}, {pipeline_mode = #tpu.pipeline_mode<synchronous>, transform_indices = @transform_1, window_bounds = array<i64: 1, 32>}, {pipeline_mode = #tpu.pipeline_mode<synchronous>, transform_indices = @transform_2, window_bounds = array<i64: 1, 32>}, {transform_indices = @transform_3, window_bounds = array<i64: 16, 32>}]} {
    %c0 = arith.constant 0 : index
    %c0_0 = arith.constant 0 : index
    %0 = vector.load %arg1[%c0, %c0_0] : memref<16x32xf32, #tpu.memory_space<vmem>>, vector<16x32xf32>
    %cst = arith.constant dense<0.000000e+00> : vector<16xf32>
    %1 = vector.multi_reduction <add>, %0, %cst [1] : vector<16x32xf32> to vector<16xf32>
    %2 = vector.shape_cast %1 : vector<16xf32> to vector<16x1xf32>
    %cst_1 = arith.constant 3.200000e+01 : f32
    %3 = vector.broadcast %cst_1 : f32 to vector<16x1xf32>
    %4 = arith.divf %2, %3 : vector<16x1xf32>
    %5 = vector.broadcast %4 : vector<16x1xf32> to vector<16x32xf32>
    %6 = arith.subf %0, %5 : vector<16x32xf32>
    %7 = arith.mulf %6, %6 : vector<16x32xf32>
    %cst_2 = arith.constant dense<0.000000e+00> : vector<16xf32>
    %8 = vector.multi_reduction <add>, %7, %cst_2 [1] : vector<16x32xf32> to vector<16xf32>
    %9 = vector.shape_cast %8 : vector<16xf32> to vector<16x1xf32>
    %cst_3 = arith.constant 3.200000e+01 : f32
    %10 = vector.broadcast %cst_3 : f32 to vector<16x1xf32>
    %11 = arith.divf %9, %10 : vector<16x1xf32>
    %cst_4 = arith.constant 9.99999974E-6 : f32
    %12 = vector.broadcast %cst_4 : f32 to vector<16x1xf32>
    %13 = arith.addf %11, %12 : vector<16x1xf32>
    %14 = math.rsqrt %13 : vector<16x1xf32>
    %15 = vector.broadcast %14 : vector<16x1xf32> to vector<16x32xf32>
    %16 = arith.mulf %6, %15 : vector<16x32xf32>
    %c0_5 = arith.constant 0 : index
    %c0_6 = arith.constant 0 : index
    %17 = vector.load %arg2[%c0_5, %c0_6] : memref<1x32xf32, #tpu.memory_space<vmem>>, vector<1x32xf32>
    %18 = vector.broadcast %17 : vector<1x32xf32> to vector<16x32xf32>
    %19 = arith.mulf %16, %18 : vector<16x32xf32>
    %c0_7 = arith.constant 0 : index
    %c0_8 = arith.constant 0 : index
    %20 = vector.load %arg3[%c0_7, %c0_8] : memref<1x32xf32, #tpu.memory_space<vmem>>, vector<1x32xf32>
    %21 = vector.broadcast %20 : vector<1x32xf32> to vector<16x32xf32>
    %22 = arith.addf %19, %21 : vector<16x32xf32>
    %c0_9 = arith.constant 0 : index
    %c0_10 = arith.constant 0 : index
    %23 = vector.load %arg4[%c0_9, %c0_10] : memref<16x32xf32, #tpu.memory_space<vmem>>, vector<16x32xf32>
    tpu.vector_store %arg4[%c0_9, %c0_10], %22 {strides = array<i32>} : memref<16x32xf32, #tpu.memory_space<vmem>>, vector<16x32xf32>,
    return
  }
  func.func @transform_0(%arg0: i32) -> (i32, i32) {
    %c0_i32 = arith.constant 0 : i32
    %c0_i32_0 = arith.constant 0 : i32
    return %arg0, %c0_i32 : i32, i32
  }
  func.func @transform_1(%arg0: i32) -> (i32, i32) {
    %c0_i32 = arith.constant 0 : i32
    %c0_i32_0 = arith.constant 0 : i32
    %c0_i32_1 = arith.constant 0 : i32
    return %c0_i32, %c0_i32_0 : i32, i32
  }
  func.func @transform_2(%arg0: i32) -> (i32, i32) {
    %c0_i32 = arith.constant 0 : i32
    %c0_i32_0 = arith.constant 0 : i32
    %c0_i32_1 = arith.constant 0 : i32
    return %c0_i32, %c0_i32_0 : i32, i32
  }
  func.func @transform_3(%arg0: i32) -> (i32, i32) {
    %c0_i32 = arith.constant 0 : i32
    %c0_i32_0 = arith.constant 0 : i32
    return %arg0, %c0_i32 : i32, i32
  }
}

</mosaic_0001>

<bundles_post_ra>
// kernel: run.5
= control target key start
LH: loop header
LB: loop body
LE: loop exit
PB: predicated region body
PF: predicated region fallthrough
CT: control target
= control target key end

     0   :  { %vm16_vm0 = vcmask 261120   ;;  %s118_s0 = inlined_call_operand.vmem [shape: f32[16,32], index: 0, kind: input, shape index: {}]   ;;  %s119_s1 = inlined_call_operand.vmem [shape: f32[1,32], index: 1, kind: input, shape index: {}]   ;;  %s120_s2 = inlined_call_operand.vmem [shape: f32[1,32], index: 2, kind: input, shape index: {}]   ;;  %s121_s3 = inlined_call_operand.vmem [shape: f32[16,32], index: 3, kind: output, shape index: {}]  }
   0x1   :  { %v14_v0 = vld [vmem:[%s118_s0] sm:$0xff]  ;;  %v15_v1 = vld [vmem:[%s118_s0 + $0x8] sm:$0xff] }
   0x2   :  { %v17_v2 = vsel %vm16_vm0, %v14_v0, 0.0  ;;  %v20_v3 = vsel %vm16_vm0, %v15_v1, 0.0  ;;  %v68_v21 = vld [vmem:[%s119_s1] ss:$0 sm:$0xff] }
   0x3   :  { %18 = vadd.xlane.f32.xlu0 %v17_v2  ;;  %v69_v23 = vld [vmem:[%s120_s2] ss:$0 sm:$0xff] }
   0x7   :  { %21 = vadd.xlane.f32.xlu0 %v20_v3 }
  0x90   :  { %v19_v4 = vpop.xlane.xlu0 %18 }
  0x91   :  { %v24_v5 = vmul.f32 0.03125, %v19_v4 }
  0x93   :  { %v26_v6 = vsub.f32 %v14_v0, %v24_v5 }
  0x94   :  { %v22_v7 = vpop.xlane.xlu0 %21 }
  0x95   :  { %v25_v8 = vmul.f32 0.03125, %v22_v7  ;;  %v28_v9 = vmul.f32 %v26_v6, %v26_v6 }
  0x97   :  { %v27_v10 = vsub.f32 %v15_v1, %v25_v8  ;;  %v30_v11 = vsel %vm16_vm0, %v28_v9, 0.0 }
  0x98   :  { %31 = vadd.xlane.f32.xlu1 %v30_v11 }
  0x99   :  { %v29_v12 = vmul.f32 %v27_v10, %v27_v10 }
  0x9b   :  { %v33_v13 = vsel %vm16_vm0, %v29_v12, 0.0 }
  0x9c   :  { %34 = vadd.xlane.f32.xlu1 %v33_v13 }
 0x125   :  { %v32_v14 = vpop.xlane.xlu1 %31 }
 0x126   :  { %v36_v15 = vmul.f32 0.03125, %v32_v14 }
 0x128   :  { %v38_v16 = vadd.f32 1e-05, %v36_v15 }
 0x129   :  { %v35_v17 = vpop.xlane.xlu1 %34 }
 0x12a   :  { %70 = vrsqrt.f32 %v38_v16  ;;  %v37_v18 = vmul.f32 0.03125, %v35_v17 }
 0x12c   :  { %v39_v19 = vadd.f32 1e-05, %v37_v18 }
 0x12e   :  { %72 = vrsqrt.f32 %v39_v19 }
 0x134   :  { %v71_v20 = vpop.eup %70 }
 0x135   :  { %v42_v22 = vmul.f32 %v71_v20, %v26_v6 }
 0x137   :  { %v51_v24 = vmul.f32 %v68_v21, %v42_v22 }
 0x138   :  { %v73_v25 = vpop.eup %72 }
 0x139   :  { %v60_v26 = vadd.f32 %v69_v23, %v51_v24  ;;  %v43_v27 = vmul.f32 %v73_v25, %v27_v10 }
 0x13b   :  { %62 = vst.msk [vmem:[%s121_s3] sm:$0xff] %vm16_vm0, %v60_v26  ;;  %v52_v28 = vmul.f32 %v68_v21, %v43_v27 }
 0x13d   :  { %v61_v29 = vadd.f32 %v69_v23, %v52_v28 }
 0x13f   :  { %63 = vst.msk [vmem:[%s121_s3 + $0x8] sm:$0xff] %vm16_vm0, %v61_v29 }

// kernel: run.3
= control target key start
LH: loop header
LB: loop body
LE: loop exit
PB: predicated region body
PF: predicated region fallthrough
CT: control target
= control target key end

     0   :  { %s3999_s0 = inlined_call_operand.vmem [shape: f32[2,8,32], index: 0, kind: input, shape index: {}]   ;;  %s4000_s1 = inlined_call_operand.vmem [shape: f32[2,10,32], index: 1, kind: input, shape index: {}]   ;;  %s4001_s2 = inlined_call_operand.vmem [shape: bf16[32,96], index: 2, kind: input, shape index: {}]   ;;  %s4002_s3 = inlined_call_operand.vmem [shape: f32[1,96], index: 3, kind: input, shape index: {}]   ;;  %s4003_s4 = inlined_call_operand.vmem [shape: bf16[32,32], index: 4, kind: input, shape index: {}]   ;;  %s4004_s5 = inlined_call_operand.vmem [shape: f32[1,32], index: 5, kind: input, shape index: {}]   ;;  %s4005_s6 = inlined_call_operand.vmem [shape: f32[1,32], index: 6, kind: input, shape index: {}]   ;;  %s4006_s7 = inlined_call_operand.vmem [shape: f32[1,32], index: 7, kind: input, shape index: {}]   ;;  %s4007_s8 = inlined_call_operand.vmem [shape: bf16[32,32], index: 8, kind: input, shape index: {}]   ;;  %s4008_s9 = inlined_call_operand.vmem [shape: f32[1,32], index: 9, kind: input, shape index: {}]   ;;  %s4009_s10 = inlined_call_operand.vmem [shape: bf16[32,64], index: 10, kind: input, shape index: {}]   ;;  %s4010_s11 = inlined_call_operand.vmem [shape: f32[1,64], index: 11, kind: input, shape index: {}]   ;;  %s4011_s12 = inlined_call_operand.vmem [shape: bf16[32,32], index: 12, kind: input, shape index: {}]   ;;  %s4012_s13 = inlined_call_operand.vmem [shape: f32[1,32], index: 13, kind: input, shape index: {}]   ;;  %s4013_s14 = inlined_call_operand.vmem [shape: f32[1,32], index: 14, kind: input, shape index: {}]   ;;  %s4014_s15 = inlined_call_operand.vmem [shape: f32[1,32], index: 15, kind: input, shape index: {}]   ;;  %s4015_s16 = inlined_call_operand.vmem [shape: bf16[32,64], index: 16, kind: input, shape index: {}]   ;;  %s4016_s17 = inlined_call_operand.vmem [shape: f32[1,64], index: 17, kind: input, shape index: {}]   ;;  %s4017_s18 = inlined_call_operand.vmem [shape: bf16[64,32], index: 18, kind: input, shape index: {}]   ;;  %s4018_s19 = inlined_call_operand.vmem [shape: f32[1,32], index: 19, kind: input, shape index: {}]   ;;  %s4019_s20 = inlined_call_operand.vmem [shape: f32[1,32], index: 20, kind: input, shape index: {}]   ;;  %s4020_s21 = inlined_call_operand.vmem [shape: f32[1,32], index: 21, kind: input, shape index: {}]   ;;  %s4021_s22 = inlined_call_operand.vmem [shape: f32[2,8,32], index: 22, kind: output, shape index: {}]  }
   0x1   :  { %4032 = sst [smem:[#allocation2_spill]] %s3999_s0 }
   0x2   :  { %4033 = sst [smem:[#allocation3_spill]] %s4000_s1 }
   0x3   :  { %4034 = sst [smem:[#allocation4_spill]] %s4001_s2 }
   0x4   :  { %4035 = sst [smem:[#allocation5_spill]] %s4002_s3  ;;  %s3609_s3 = smov 0  }
   0x5   :  { %4036 = sst [smem:[#allocation6_spill]] %s4003_s4 }
   0x6   :  { %4037 = sst [smem:[#allocation7_spill]] %s4004_s5 }
   0x7   :  { %4038 = sst [smem:[#allocation8_spill]] %s4005_s6 }
   0x8 LB: > { %s2988_s28 = sadd.s32 4294967295, %s3477_s3   ;;  %p2992_p0 = scmp.ge.s32.totalorder %s3477_s3, 1  ;;  %s3477_s3 = sphi %s3609_s3, %s32_s3  }
   0x9   : > { %p621_p1 = scmp.lt.s32.totalorder %s3477_s3, 3 }
   0xb   : > { %p622_p2 = pnand %p2992_p0, %p621_p1 }
   0xc   : > { %s4039_s4 = sld [smem:[#allocation4_spill]] (!%p622_p2)  ;;  %v3479_v1 = vmov (!%p622_p2), 0.0   ;;  %vm3480_vm0 = vmmov (!%p622_p2), 0   ;;  %p686_p3 = scmp.lt.s32.totalorder (!%p622_p2), %s2988_s28, 1  ;;  %vm727_vm1 = vcmask (!%p622_p2), 261120   ;;  %vm783_vm2 = vcmask (!%p622_p2), 64512  }
   0xd   : > { %625 = sbr.rel (%p622_p2) target bundleno = 6005 (0x1775), region = 108  ;;  %3143 = vmatprep.subr.bf16.mxu0 (!%p622_p2), %v3479_v1  ;;  %3151 = vmatprep.subr.mxu1 (!%p622_p2), %v3479_v1  ;;  %s4040_s6 = sld [smem:[#allocation2_spill]] (!%p622_p2)  ;;  %v771_v13 = vlaneseq (!%p622_p2)  ;;  %vm1119_vm4 = vcmask (!%p622_p2), 1043456   ;;  %vm3814_vm5 = vmpackc.low (!%p622_p2), %vm783_vm2, %vm783_vm2  ;;  %vm1897_vm6 = vcmask (!%p622_p2), 80896   ;;  %vm1915_vm7 = vcmask (!%p622_p2), 1041408  }
   0xe   : > { %3147 = vmatprep.mubr.msk.bf16.mxu0 (!%p622_p2), %vm3480_vm0, %v3479_v1  ;;  %3153 = vmatprep.mubr.msk.f32.mxu1 (!%p622_p2), %vm3480_vm0, %v3479_v1  ;;  %s4041_s27 = sld [smem:[#allocation5_spill]] (!%p622_p2)  ;;  %s3481_s29 = smov (!%p622_p2), 64   ;;  %vm3493_vm8 = vmmov (!%p622_p2), 1   ;;  %vm2848_vm10 = vcmask (!%p622_p2), 523264  }
   0xf   : > { %s4031_s30 = smov (!%p622_p2), 96   ;;  %s3483_s0 = smov (!%p622_p2), 88   ;;  %v3665_v14 = vshrl.u32 (!%p622_p2), %v771_v13, 7  ;;  %v3667_v15 = vand.u32 (!%p622_p2), 127, %v771_v13  ;;  %vm3855_vm9 = vmpackc.low (!%p622_p2), %vm1915_vm7, %vm3493_vm8 }
  0x10   : > { %s3484_s23 = smov (!%p622_p2), 120   ;;  %s3485_s5 = smov (!%p622_p2), 56  }
  0x11   : > { %vm775_vm3 = vcmp.ge.s32.totalorder (!%p622_p2), %v3665_v14, %v3667_v15  ;;  %s4029_s24 = smov (!%p622_p2), 112   ;;  %s4025_s26 = smov (!%p622_p2), 72  }
  0x12   : > { %v3421_v0 = vld [vmem:[%s4039_s4] sm:$0xff] (!%p622_p2)   ;;  %v3422_v2 = vld [vmem:[%s4039_s4 + $0x8] sm:$0xff] (!%p622_p2)   ;;  %s3491_s2 = smov (!%p622_p2), 40  }
  0x13   : > { %3144 = vmatpush3.bf16.msra.mxu0 (!%p622_p2), %v3421_v0 }
  0x14   : > { %3145 = vmatprep.subr.bf16.mxu0 %v3479_v1  ;;  %s4057_s28 = smov (!%p686_p3, %s2988_s28), 1  ;;  %v2997_v5 = vld [vmem:[%s4041_s27] ss:$0 sm:$0xff]  ;;  %s4042_s27 = sld [smem:[#allocation6_spill]] }
  0x15   : > { %s4024_s1 = sshll.u32 %s4057_s28, 3 }
  0x16   : > { %s689_s25 = scalar_lea.vmem %s4040_s6, %s4024_s1  ;;  %s3487_s6 = smov 48  }
  0x17   : > { %3146 = vmatpush3.bf16.msra.mxu0 %v3422_v2  ;;  %v3639_v3 = vld [vmem:[%s689_s25] sm:$0xff]  ;;  %s4027_s25 = smov 104  }
  0x18   : > { %3166 = vmatprep.subr.mxu0 %v3479_v1  ;;  %v703_v4 = vpack.c.bf16 %v3639_v3, %v3639_v3 }
  0x1a   : > { %3148 = vmatmul.mubr.msk.bf16.vlgmr.msra.gmra.mrb[0].mxu0 %vm727_vm1, %v703_v4  ;;  %v776_v41 = vld [vmem:[%s4042_s27] sm:$0xf]  ;;  %v777_v49 = vld [vmem:[%s4042_s27 + $0x4] sm:$0xf]  ;;  %v779_v14 = vld [vmem:[%s4042_s27 + $0xc] sm:$0xf] }
  0x1b   : > { %3168 = vmatprep.mubr.msk.f32.mxu0 %vm3480_vm0, %v3479_v1  ;;  %v1167_v44 = vsel %vm1119_vm4, %v776_v41, 0  ;;  %v1121_v50 = vsel %vm1119_vm4, %v777_v49, 0  ;;  %v1596_v15 = vsel %vm1119_vm4, %v779_v14, 0 }
  0xed   : > { %v765_v6 = vpop.f32.mrb[0].mxu0 }
  0xee   : > { %v3649_v7 = vadd.f32 %v2997_v5, %v765_v6  ;;  %v3149_v8 = vpop.f32.mrb[1].mxu0 }
  0xef   : > { %v768_v9 = vpop.f32.mrb[2].mxu0 }
  0xf0   : > { %869 = vrot.lane.b32.xlu1 %v3649_v7, %s3481_s29  ;;  %781 = vrot.lane.b32.xlu0 %v3649_v7, %s4031_s30  ;;  %v3150_v10 = vpop.f32.mrb[3].mxu0  ;;  %s4026_s29 = smov 80   ;;  %s4049_s30 = smov 112  }
  0xf4   : > { %950 = vrot.lane.b32.xlu1 %v3649_v7, %s3483_s0 }
  0xf8   : > { %948 = vrot.lane.b32.xlu1 %v3649_v7, %s3484_s23 }
 0x162   : > { %v782_v11 = vpop.permute.xlu0 %781  ;;  %v870_v12 = vpop.permute.xlu1 %869 }
 0x163   : > { %3152 = vmatpush3.xpose.msk.msra.mxu1 %vm783_vm2, %v782_v11 }
 0x164   : > { %3156 = vmatprep.subr.mxu1 %v3479_v1 }
 0x166   : > { %3154 = vmatmul.mubr.msk.f32.vlgmr.msra.gmra.mrb[0].mxu1 %vm783_vm2, %v3649_v7  ;;  %v951_v25 = vpop.permute.xlu1 %950 }
 0x167   : > { %3157 = vmatpush3.msra.mxu1 %v870_v12  ;;  %3158 = vmatprep.mubr.msk.f32.mxu1 %vm3480_vm0, %v3479_v1 }
 0x168   : > { %3161 = vmatprep.subr.mxu1 %v3479_v1 }
 0x16a   : > { %v949_v28 = vpop.permute.xlu1 %948 }
 0x239   : > { %v854_v16 = vpop.f32.mrb[0].mxu1 }
 0x23a   : > { %v858_v17 = vmul.f32 0.35355338, %v854_v16  ;;  %v3155_v18 = vpop.f32.mrb[1].mxu1 }
 0x23c   : > { %v859_v19 = vsel %vm775_vm3, %v858_v17, -1e+30 }
 0x23d   : > { %v860_v20 = vsel %vm783_vm2, %v859_v19, -inf }
 0x23e   : > { %861 = vmax.xlane.f32.xlu0 %v860_v20  ;;  %v778_v20 = vld [vmem:[%s4042_s27 + $0x8] sm:$0xf] }
 0x254   : > { %1037 = vrot.lane.b32.xlu0 %v3649_v7, %s3485_s5  ;;  %s4043_s5 = sld [smem:[#allocation7_spill]] }
 0x258   : > { %1209 = vrot.lane.b32.xlu0 %v3649_v7, %s4029_s24  ;;  %s4044_s24 = sld [smem:[#allocation3_spill]] }
 0x2cb   : > { %v862_v21 = vpop.xlane.xlu0 %861 }
 0x2cc   : > { %v863_v22 = vsub.f32 %v859_v19, %v862_v21  ;;  %v1381_v21 = vsel %vm1119_vm4, %v778_v20, 0  ;;  %v3024_v20 = vld [vmem:[%s4010_s11] ss:$0 sm:$0xff] }
 0x2ce   : > { %v864_v23 = vmul.f32 1.442695, %v863_v22 }
 0x2cf   : > { %v1038_v24 = vpop.permute.xlu0 %1037 }
 0x2d0   : > { %3433 = vpow2.f32 %v864_v23  ;;  %3167 = vmatpush3.msra.mxu0 %v1038_v24 }
 0x2d1   : > { %3177 = vmatprep.subr.bf16.mxu0 %v3479_v1 }
 0x2d3   : > { %v1210_v36 = vpop.permute.xlu0 %1209 }
 0x2da   : > { %v3434_v26 = vpop.eup %3433 }
 0x2db   : > { %3159 = vmatmul.mubr.msk.f32.vlgmr.msra.gmra.mrb[2].mxu1 %vm783_vm2, %v3434_v26  ;;  %v866_v27 = vsel %vm783_vm2, %v3434_v26, 0.0 }
 0x2dc   : > { %3162 = vmatpush3.xpose.msk.msra.mxu1 %vm783_vm2, %v951_v25  ;;  %867 = vadd.xlane.f32.xlu0 %v866_v27 }
 0x2dd   : > { %3163 = vmatprep.mubr.msk.f32.mxu1 %vm3480_vm0, %v3479_v1  ;;  %3171 = vmatprep.subr.bf16.mxu1 %v3479_v1 }
 0x2df   : > { %3164 = vmatmul.mubr.msk.f32.vlgmr.msra.gmra.mrb[4].mxu1 %vm783_vm2, %v949_v28 }
 0x2e0   : > { %3173 = vmatprep.mubr.msk.bf16.mxu1 %vm3480_vm0, %v3479_v1  ;;  %3172 = vmatpush3.bf16.msra.mxu1 %v1121_v50  ;;  %v3017_v50 = vld [vmem:[%s4043_s5] ss:$0 sm:$0xff]  ;;  %s4054_s5 = smov 72  }
 0x2e1   : > { %3183 = vmatprep.subr.mxu1 %v3479_v1 }
 0x2f2   : > { %1298 = vrot.lane.b32.xlu0 %v3649_v7, %s3487_s6  ;;  %s3069_s6 = sshll.u32 %s4057_s28, 4 }
 0x2f3   : > { %s694_s1 = scalar_lea.vmem %s4044_s24, %s3069_s6  ;;  %s4053_s24 = smov 80  }
 0x2f4   : > { %s4055_s6 = sshll.u32 %s4057_s28, 3 }
 0x2f6   : > { %1424 = vrot.lane.b32.xlu0 %v3649_v7, %s4027_s25  ;;  %s4045_s25 = sld [smem:[#allocation8_spill]] }
 0x369   : > { %v868_v37 = vpop.xlane.xlu0 %867 }
 0x36a   : > { %3435 = vrcp.f32 %v868_v37 }
 0x36d   : > { %v1299_v48 = vpop.permute.xlu0 %1298 }
 0x371   : > { %v1425_v19 = vpop.permute.xlu0 %1424 }
 0x374   : > { %v3436_v42 = vpop.eup %3435 }
 0x3ae   : > { %v941_v29 = vpop.f32.mrb[2].mxu1 }
 0x3af   : > { %v3160_v30 = vpop.f32.mrb[3].mxu1  ;;  %v946_v43 = vmul.f32 %v3436_v42, %v941_v29 }
 0x3b1   : > { %v947_v47 = vpack.c.bf16 %v946_v43, %v946_v43 }
 0x3b2   : > { %v1022_v31 = vpop.f32.mrb[4].mxu1 }
 0x3b3   : > { %v1026_v32 = vmul.f32 0.35355338, %v1022_v31  ;;  %v3165_v33 = vpop.f32.mrb[5].mxu1 }
 0x3b5   : > { %v1027_v34 = vsel %vm775_vm3, %v1026_v32, -1e+30 }
 0x3b6   : > { %v1028_v35 = vsel %vm783_vm2, %v1027_v34, -inf }
 0x3b7   : > { %1029 = vmax.xlane.f32.xlu1 %v1028_v35 }
 0x444   : > { %v1030_v38 = vpop.xlane.xlu1 %1029 }
 0x445   : > { %v1031_v39 = vsub.f32 %v1027_v34, %v1030_v38 }
 0x447   : > { %v1032_v40 = vmul.f32 1.442695, %v1031_v39 }
 0x449   : > { %3437 = vpow2.f32 %v1032_v40 }
 0x453   : > { %v3438_v45 = vpop.eup %3437 }
 0x454   : > { %3169 = vmatmul.mubr.msk.f32.vlgmr.msra.gmra.mrb[4].mxu0 %vm783_vm2, %v3438_v45  ;;  %v1034_v46 = vsel %vm783_vm2, %v3438_v45, 0.0 }
 0x455   : > { %3178 = vmatpush3.bf16.msra.mxu0 %v1167_v44  ;;  %1035 = vadd.xlane.f32.xlu1 %v1034_v46 }
 0x456   : > { %3179 = vmatprep.mubr.msk.bf16.mxu0 %vm3480_vm0, %v3479_v1  ;;  %3188 = vmatprep.subr.mxu0 %v3479_v1 }
 0x458   : > { %3180 = vmatmul.mubr.msk.bf16.vlgmr.msra.gmra.mrb[8].mxu0 %vm783_vm2, %v947_v47 }
 0x459   : > { %3189 = vmatpush3.msra.mxu0 %v1299_v48  ;;  %3190 = vmatprep.mubr.msk.f32.mxu0 %vm3480_vm0, %v3479_v1 }
 0x45a   : > { %3199 = vmatprep.subr.mxu0 %v3479_v1 }
 0x466   : > { %1211 = vrot.lane.b32.xlu1 %v3649_v7, %s4026_s29 }
 0x4e2   : > { %v1036_v51 = vpop.xlane.xlu1 %1035 }
 0x4e3   : > { %3439 = vrcp.f32 %v1036_v51 }
 0x4e6   : > { %v1212_v58 = vpop.permute.xlu1 %1211 }
 0x4ed   : > { %v3440_v52 = vpop.eup %3439 }
 0x527   : > { %v1109_v53 = vpop.f32.mrb[4].mxu0 }
 0x528   : > { %v1114_v54 = vmul.f32 %v3440_v52, %v1109_v53  ;;  %v3170_v55 = vpop.f32.mrb[5].mxu0 }
 0x52a   : > { %v1115_v56 = vpack.c.bf16 %v1114_v54, %v1114_v54 }
 0x52b   : > { %v1203_v57 = vpop.f32.mrb[8].mxu0 }
 0x52c   : > { %3174 = vmatmul.mubr.msk.bf16.vlgmr.msra.gmra.mrb[8].mxu1 %vm783_vm2, %v1115_v56  ;;  %v3181_v59 = vpop.f32.mrb[9].mxu0 }
 0x52d   : > { %3184 = vmatpush3.xpose.msk.msra.mxu1 %vm783_vm2, %v1212_v58  ;;  %v1206_v60 = vpop.f32.mrb[10].mxu0  ;;  %3185 = vmatprep.mubr.msk.f32.mxu1 %vm3480_vm0, %v3479_v1  ;;  %v3423_v58 = vld [vmem:[%s4009_s10] sm:$0xff]  }
 0x52e   : > { %v3182_v61 = vpop.f32.mrb[11].mxu0  ;;  %3193 = vmatprep.subr.bf16.mxu1 %v3479_v1 }
 0x534   : > { %3186 = vmatmul.mubr.msk.f32.vlgmr.msra.gmra.mrb[6].mxu1 %vm783_vm2, %v1210_v36 }
 0x535   : > { %3195 = vmatprep.mubr.msk.bf16.mxu1 %vm3480_vm0, %v3479_v1  ;;  %3194 = vmatpush3.bf16.msra.mxu1 %v1381_v21 }
 0x536   : > { %3209 = vmatprep.subr.bf16.mxu1 %v3479_v1 }
 0x5ff   : > { %v1157_v62 = vpop.f32.mrb[8].mxu1 }
 0x600   : > { %v3723_v63 = vadd.f32 %v1203_v57, %v1157_v62  ;;  %v3175_v0 = vpop.f32.mrb[9].mxu1 }
 0x601   : > { %v1160_v2 = vpop.f32.mrb[10].mxu1  ;;  %v701_v0 = vld [vmem:[%s694_s1] sm:$0xff] }
 0x602   : > { %v3176_v4 = vpop.f32.mrb[11].mxu1  ;;  %v702_v2 = vld [vmem:[%s694_s1 + $0x8] sm:$0x3] }
 0x603   : > { %v1745_v4 = vpack.c.bf16 %v702_v2, %v701_v0  ;;  %v1814_v2 = vld [vmem:[%s4011_s12 + $0x4] sm:$0xf] }
 0x607   : > { %v1283_v5 = vpop.f32.mrb[6].mxu1 }
 0x608   : > { %v1287_v6 = vmul.f32 0.35355338, %v1283_v5  ;;  %v3187_v8 = vpop.f32.mrb[7].mxu1  ;;  %v3425_v5 = vld [vmem:[%s4007_s8] sm:$0xff]  }
 0x609   : > { %v3492_v8 = vmov 0.0|0.0  }
 0x60a   : > { %v1288_v9 = vsel %vm775_vm3, %v1287_v6, -1e+30  ;;  %v3426_v6 = vld [vmem:[%s4007_s8 + $0x8] sm:$0xff]  }
 0x60b   : > { %v1289_v10 = vsel %vm783_vm2, %v1288_v9, -inf }
 0x60c   : > { %1290 = vmax.xlane.f32.xlu1 %v1289_v10 }
 0x61d   : > { %1426 = vrot.lane.b32.xlu1 %v3649_v7, %s4025_s26 }
 0x621   : > { %1513 = vrot.lane.b32.xlu1 %v3649_v7, %s3491_s2  ;;  %s698_s2 = scalar_lea.vmem %s4021_s22, %s4055_s6 }
 0x699   : > { %v1291_v11 = vpop.xlane.xlu1 %1290 }
 0x69a   : > { %v1292_v12 = vsub.f32 %v1288_v9, %v1291_v11 }
 0x69c   : > { %v1293_v13 = vmul.f32 1.442695, %v1292_v12 }
 0x69d   : > { %v1427_v16 = vpop.permute.xlu1 %1426 }
 0x69e   : > { %3441 = vpow2.f32 %v1293_v13  ;;  %v3018_v13 = vld [vmem:[%s4045_s25] ss:$0 sm:$0xff] }
 0x6a1   : > { %v1514_v7 = vpop.permute.xlu1 %1513 }
 0x6a8   : > { %v3442_v17 = vpop.eup %3441 }
 0x6a9   : > { %3191 = vmatmul.mubr.msk.f32.vlgmr.msra.gmra.mrb[6].mxu0 %vm783_vm2, %v3442_v17  ;;  %v1295_v18 = vsel %vm783_vm2, %v3442_v17, 0.0  ;;  %v3019_v17 = vld [vmem:[%s4006_s7] ss:$0 sm:$0xff] }
 0x6aa   : > { %3200 = vmatpush3.xpose.msk.msra.mxu0 %vm783_vm2, %v1427_v16  ;;  %1296 = vadd.xlane.f32.xlu1 %v1295_v18 }
 0x6ab   : > { %3201 = vmatprep.mubr.msk.f32.mxu0 %vm3480_vm0, %v3479_v1  ;;  %3204 = vmatprep.subr.mxu0 %v3479_v1 }
 0x6ad   : > { %3202 = vmatmul.mubr.msk.f32.vlgmr.msra.gmra.mrb[12].mxu0 %vm783_vm2, %v1425_v19 }
 0x6ae   : > { %3205 = vmatpush3.msra.mxu0 %v1514_v7  ;;  %3206 = vmatprep.mubr.msk.f32.mxu0 %vm3480_vm0, %v3479_v1 }
 0x6af   : > { %3215 = vmatprep.subr.bf16.mxu0 %v3479_v1 }
 0x737   : > { %v1297_v22 = vpop.xlane.xlu1 %1296 }
 0x738   : > { %3443 = vrcp.f32 %v1297_v22 }
 0x742   : > { %v3444_v23 = vpop.eup %3443 }
 0x77c   : > { %v1370_v24 = vpop.f32.mrb[6].mxu0 }
 0x77d   : > { %v1375_v25 = vmul.f32 %v3444_v23, %v1370_v24  ;;  %v3192_v26 = vpop.f32.mrb[7].mxu0 }
 0x77f   : > { %v1376_v27 = vpack.c.bf16 %v1375_v25, %v1375_v25 }
 0x780   : > { %v1498_v28 = vpop.f32.mrb[12].mxu0 }
 0x781   : > { %v1502_v29 = vmul.f32 0.35355338, %v1498_v28  ;;  %3196 = vmatmul.mubr.msk.bf16.vlgmr.msra.gmra.mrb[12].mxu1 %vm783_vm2, %v1376_v27  ;;  %v3203_v30 = vpop.f32.mrb[13].mxu0 }
 0x782   : > { %3211 = vmatprep.mubr.msk.bf16.mxu1 %vm3480_vm0, %v3479_v1  ;;  %3210 = vmatpush3.bf16.msra.mxu1 %v1596_v15 }
 0x783   : > { %v1503_v31 = vsel %vm775_vm3, %v1502_v29, -1e+30  ;;  %3223 = vmatprep.subr.bf16.mxu1 %v3479_v1 }
 0x784   : > { %v1504_v32 = vsel %vm783_vm2, %v1503_v31, -inf }
 0x785   : > { %1505 = vmax.xlane.f32.xlu0 %v1504_v32 }
 0x812   : > { %v1506_v33 = vpop.xlane.xlu0 %1505 }
 0x813   : > { %v1507_v34 = vsub.f32 %v1503_v31, %v1506_v33 }
 0x815   : > { %v1508_v35 = vmul.f32 1.442695, %v1507_v34  ;;  %v3020_v34 = vld [vmem:[%s4008_s9] ss:$0 sm:$0xff] }
 0x817   : > { %3445 = vpow2.f32 %v1508_v35 }
 0x821   : > { %v3446_v36 = vpop.eup %3445 }
 0x822   : > { %3207 = vmatmul.mubr.msk.f32.vlgmr.msra.gmra.mrb[14].mxu0 %vm783_vm2, %v3446_v36  ;;  %v1510_v37 = vsel %vm783_vm2, %v3446_v36, 0.0 }
 0x823   : > { %1511 = vadd.xlane.f32.xlu0 %v1510_v37  ;;  %3219 = vmatprep.mubr.msk.bf16.mxu0 %vm3480_vm0, %v3479_v1 }
 0x824   : > { %3216 = vmatpush3.bf16.msra.mxu0 %v3425_v5  ;;  %v1813_v5 = vld [vmem:[%s4011_s12] sm:$0xf] }
 0x825   : > { %3217 = vmatprep.subr.bf16.mxu0 %v3479_v1 }
 0x828   : > { %3218 = vmatpush3.bf16.msra.mxu0 %v3426_v6  ;;  %v2216_v6 = vsel %vm1119_vm4, %v1813_v5, 0 }
 0x829   : > { %3339 = vmatprep.subr.bf16.mxu0 %v3492_v8 }
 0x854   : > { %v1417_v38 = vpop.f32.mrb[12].mxu1 }
 0x855   : > { %v1423_v39 = vadd.f32 %v1417_v38, %v3723_v63  ;;  %v3197_v40 = vpop.f32.mrb[13].mxu1 }
 0x856   : > { %v1420_v41 = vpop.f32.mrb[14].mxu1 }
 0x857   : > { %v3198_v42 = vpop.f32.mrb[15].mxu1 }
 0x8b0   : > { %v1512_v43 = vpop.xlane.xlu0 %1511 }
 0x8b1   : > { %3447 = vrcp.f32 %v1512_v43 }
 0x8bb   : > { %v3448_v44 = vpop.eup %3447 }
 0x8f5   : > { %v1585_v45 = vpop.f32.mrb[14].mxu0 }
 0x8f6   : > { %v1590_v46 = vmul.f32 %v3448_v44, %v1585_v45  ;;  %v3208_v47 = vpop.f32.mrb[15].mxu0 }
 0x8f8   : > { %v1591_v48 = vpack.c.bf16 %v1590_v46, %v1590_v46 }
 0x8fa   : > { %3212 = vmatmul.mubr.msk.bf16.vlgmr.msra.gmra.mrb[16].mxu1 %vm783_vm2, %v1591_v48 }
 0x8fb   : > { %3227 = vmatprep.mubr.msk.bf16.mxu1 %vm3480_vm0, %v3479_v1  ;;  %3224 = vmatpush3.bf16.msra.mxu1 %v3423_v58 }
 0x8fc   : > { %3225 = vmatprep.subr.bf16.mxu1 %v3479_v1 }
 0x9cd   : > { %v1632_v49 = vpop.f32.mrb[16].mxu1 }
 0x9ce   : > { %v1638_v51 = vadd.f32 %v1632_v49, %v1423_v39  ;;  %v3213_v52 = vpop.f32.mrb[17].mxu1 }
 0x9cf   : > { %v1635_v53 = vpop.f32.mrb[18].mxu1 }
 0x9d0   : > { %v1646_v54 = vadd.f32 %v3017_v50, %v1638_v51  ;;  %v3214_v55 = vpop.f32.mrb[19].mxu1 }
 0x9d2   : > { %v1647_v56 = vadd.f32 %v1646_v54, %v3639_v3  ;;  %v3424_v3 = vld [vmem:[%s4009_s10 + $0x8] sm:$0xff]  }
 0x9d3   : > { %3226 = vmatpush3.bf16.msra.mxu1 %v3424_v3 }
 0x9d4   : > { %v1648_v57 = vsel %vm727_vm1, %v1647_v56, 0.0  ;;  %3331 = vmatprep.subr.bf16.mxu1 %v3492_v8 }
 0x9d5   : > { %1649 = vadd.xlane.f32.xlu0 %v1648_v57 }
 0x9d6   : > { %3228 = vmatmul.mubr.msk.bf16.vlgmr.msra.gmra.mrb[20].mxu1 %vm727_vm1, %v1745_v4  ;;  %v2170_v4 = vsel %vm1119_vm4, %v1814_v2, 0 }
 0x9d7   : > { %3235 = vmatprep.mubr.msk.f32.mxu1 %vm3480_vm0, %v3479_v1 }
 0xa62   : > { %v1650_v59 = vpop.xlane.xlu0 %1649 }
 0xa63   : > { %v1652_v60 = vmul.f32 0.03125, %v1650_v59  ;;  %v1816_v59 = vld [vmem:[%s4011_s12 + $0xc] sm:$0xf] }
 0xa65   : > { %v1653_v61 = vsub.f32 %v1647_v56, %v1652_v60 }
 0xa67   : > { %v1654_v62 = vmul.f32 %v1653_v61, %v1653_v61 }
 0xa69   : > { %v1655_v63 = vsel %vm727_vm1, %v1654_v62, 0.0 }
 0xa6a   : > { %1656 = vadd.xlane.f32.xlu0 %v1655_v63 }
 0xaa9   : > { %v1806_v21 = vpop.f32.mrb[20].mxu1 }
 0xaaa   : > { %v1807_v22 = vadd.f32 %v3024_v20, %v1806_v21  ;;  %v3229_v23 = vpop.f32.mrb[21].mxu1 }
 0xaab   : > { %v1809_v24 = vpop.f32.mrb[22].mxu1 }
 0xaac   : > { %v1810_v25 = vadd.f32 %v3024_v20, %v1809_v24  ;;  %v3230_v26 = vpop.f32.mrb[23].mxu1 }
 0xaae   : > { %v3818_v28 = vpack.i.bf16 %v1810_v25, %v1807_v22  ;;  %v3332_v29 = vpack.c.bf16 %v1810_v25, %v1807_v22 }
 0xab0   : > { %3387 = vrot.lane.b32.xlu0 %v3818_v28, %s3484_s23  ;;  %3334 = vmatpush3.bf16.xpose.msk.msra.mxu1 %vm3814_vm5, %v3332_v29 }
 0xab1   : > { %3335 = vmatprep.subr.bf16.mxu1 %v3492_v8 }
 0xaf7   : > { %v1657_v9 = vpop.xlane.xlu0 %1656 }
 0xaf8   : > { %v1658_v10 = vmul.f32 0.03125, %v1657_v9 }
 0xafa   : > { %v1659_v11 = vadd.f32 1e-05, %v1658_v10 }
 0xafc   : > { %3449 = vrsqrt.f32 %v1659_v11 }
 0xb06   : > { %v3450_v12 = vpop.eup %3449 }
 0xb07   : > { %v1661_v16 = vmul.f32 %v3450_v12, %v1653_v61 }
 0xb09   : > { %v1669_v18 = vmul.f32 %v3018_v13, %v1661_v16 }
 0xb0b   : > { %v3802_v19 = vadd.f32 %v3019_v17, %v1669_v18 }
 0xb0d   : > { %v1678_v7 = vpack.c.bf16 %v3802_v19, %v3802_v19 }
 0xb0f   : > { %3220 = vmatmul.mubr.msk.bf16.vlgmr.msra.gmra.mrb[16].mxu0 %vm727_vm1, %v1678_v7 }
 0xb10   : > { %3249 = vmatprep.mubr.msk.f32.mxu0 %vm3480_vm0, %v3479_v1 }
 0xb22   : > { %v3388_v30 = vpop.permute.xlu0 %3387 }
 0xb23   : > { %v3390_v31 = vunpack.i.h.bf16 %v3388_v30  ;;  %v3389_v32 = vunpack.i.l.bf16 %v3388_v30 }
 0xb25   : > { %v3340_v33 = vpack.c.bf16 %v3390_v31, %v3389_v32 }
 0xb27   : > { %3342 = vmatpush3.bf16.xpose.msk.msra.mxu0 %vm3814_vm5, %v3340_v33 }
 0xb28   : > { %3265 = vmatprep.subr.bf16.mxu0 %v3479_v1 }
 0xbe2   : > { %v1739_v35 = vpop.f32.mrb[16].mxu0 }
 0xbe3   : > { %v3831_v36 = vadd.f32 %v3020_v34, %v1739_v35  ;;  %v3221_v37 = vpop.f32.mrb[17].mxu0 }
 0xbe4   : > { %v1742_v14 = vpop.f32.mrb[18].mxu0 }
 0xbe5   : > { %1991 = vrot.lane.b32.xlu1 %v3831_v36, %s3484_s23  ;;  %v3222_v15 = vpop.f32.mrb[19].mxu0  ;;  %3236 = vmatmul.mubr.msk.f32.vlgmr.msra.gmra.mrb[24].mxu1 %vm783_vm2, %v3831_v36  ;;  %s4048_s23 = smov 96  }
 0xbe6   : > { %3242 = vmatprep.mubr.msk.f32.mxu1 %vm3480_vm0, %v3479_v1 }
 0xc57   : > { %v1992_v38 = vpop.permute.xlu1 %1991 }
 0xc58   : > { %3250 = vmatmul.mubr.msk.f32.vlgmr.msra.gmra.mrb[20].mxu0 %vm783_vm2, %v1992_v38 }
 0xc59   : > { %3267 = vmatprep.mubr.msk.bf16.mxu0 %vm3480_vm0, %v3479_v1  ;;  %3266 = vmatpush3.bf16.msra.mxu0 %v2216_v6 }
 0xc5a   : > { %3351 = vmatprep.subr.bf16.mxu0 %v3492_v8 }
 0xcb8   : > { %v1892_v39 = vpop.f32.mrb[24].mxu1 }
 0xcb9   : > { %v1896_v40 = vmul.f32 0.35355338, %v1892_v39  ;;  %v3237_v41 = vpop.f32.mrb[25].mxu1 }
 0xcbb   : > { %v1898_v42 = vsel %vm1897_vm6, %v1896_v40, -inf }
 0xcbc   : > { %1899 = vmax.xlane.f32.xlu1 %v1898_v42 }
 0xccd   : > { %3397 = vrot.lane.b32.xlu1 %v3818_v28, %s3483_s0  ;;  %s4050_s0 = smov 104  }
 0xd2b   : > { %v2069_v43 = vpop.f32.mrb[20].mxu0 }
 0xd2c   : > { %v2073_v44 = vmul.f32 0.35355338, %v2069_v43  ;;  %v3251_v45 = vpop.f32.mrb[21].mxu0 }
 0xd2e   : > { %v2074_v46 = vsel %vm1897_vm6, %v2073_v44, -inf }
 0xd2f   : > { %2075 = vmax.xlane.f32.xlu0 %v2074_v46 }
 0xd45   : > { %3392 = vrot.lane.b32.xlu0 %v3818_v28, %s4048_s23 }
 0xd49   : > { %3402 = vrot.lane.b32.xlu0 %v3818_v28, %s4049_s30  ;;  %v1900_v47 = vpop.xlane.xlu1 %1899 }
 0xd4a   : > { %v1901_v48 = vsub.f32 %v1896_v40, %v1900_v47 }
 0xd4c   : > { %v1902_v49 = vmul.f32 1.442695, %v1901_v48 }
 0xd4d   : > { %2258 = vrot.lane.b32.xlu0 %v3831_v36, %s4049_s30  ;;  %v3398_v55 = vpop.permute.xlu1 %3397 }
 0xd4e   : > { %3451 = vpow2.f32 %v1902_v49  ;;  %v3400_v60 = vunpack.i.h.bf16 %v3398_v55  ;;  %v3399_v61 = vunpack.i.l.bf16 %v3398_v55  ;;  %v1815_v55 = vld [vmem:[%s4011_s12 + $0x8] sm:$0xf] }
 0xd50   : > { %v3344_v63 = vpack.c.bf16 %v3400_v60, %v3399_v61 }
 0xd58   : > { %v3452_v50 = vpop.eup %3451 }
 0xd59   : > { %v1904_v51 = vsel %vm1897_vm6, %v3452_v50, 0.0 }
 0xd6c   : > { %1905 = vadd.xlane.f32.xlu0 %v1904_v51 }
 0xd82   : > { %3412 = vrot.lane.b32.xlu0 %v3818_v28, %s4050_s0 }
 0xdbc   : > { %v2076_v52 = vpop.xlane.xlu0 %2075 }
 0xdbd   : > { %v2077_v53 = vsub.f32 %v2073_v44, %v2076_v52 }
 0xdbf   : > { %v2078_v54 = vmul.f32 1.442695, %v2077_v53 }
 0xdc0   : > { %v3393_v56 = vpop.permute.xlu0 %3392 }
 0xdc1   : > { %3453 = vpow2.f32 %v2078_v54  ;;  %v3395_v57 = vunpack.i.h.bf16 %v3393_v56  ;;  %v3394_v58 = vunpack.i.l.bf16 %v3393_v56  ;;  %v2437_v56 = vsel %vm1119_vm4, %v1815_v55, 0  ;;  %v3432_v55 = vld [vmem:[%s4017_s18 + $0x18] sm:$0xff]  }
 0xdc3   : > { %v3336_v62 = vpack.c.bf16 %v3395_v57, %v3394_v58 }
 0xdc4   : > { %v3403_v9 = vpop.permute.xlu0 %3402 }
 0xdc5   : > { %3338 = vmatpush3.bf16.msk.msra.mxu1 %vm3855_vm9, %v3336_v62  ;;  %v3405_v24 = vunpack.i.h.bf16 %v3403_v9  ;;  %v3404_v25 = vunpack.i.l.bf16 %v3403_v9 }
 0xdc6   : > { %3343 = vmatprep.subr.bf16.mxu1 %v3492_v8 }
 0xdc7   : > { %v3348_v33 = vpack.c.bf16 %v3405_v24, %v3404_v25 }
 0xdc8   : > { %3243 = vmatmul.mubr.msk.f32.vlgmr.msra.gmra.mrb[26].mxu1 %vm1897_vm6, %v3452_v50  ;;  %v2259_v10 = vpop.permute.xlu0 %2258 }
 0xdc9   : > { %3346 = vmatpush3.bf16.msk.msra.mxu1 %vm3855_vm9, %v3344_v63  ;;  %3256 = vmatprep.mubr.msk.f32.mxu1 %vm3480_vm0, %v3479_v1 }
 0xdca   : > { %3259 = vmatprep.subr.bf16.mxu1 %v3479_v1 }
 0xdcb   : > { %v3454_v3 = vpop.eup %3453 }
 0xdcc   : > { %3257 = vmatmul.mubr.msk.f32.vlgmr.msra.gmra.mrb[28].mxu1 %vm1897_vm6, %v3454_v3  ;;  %v2080_v0 = vsel %vm1897_vm6, %v3454_v3, 0.0 }
 0xdcd   : > { %2081 = vadd.xlane.f32.xlu1 %v2080_v0  ;;  %3261 = vmatprep.mubr.msk.bf16.mxu1 %vm3480_vm0, %v3479_v1 }
 0xdce   : > { %3260 = vmatpush3.bf16.msra.mxu1 %v2170_v4 }
 0xdcf   : > { %3347 = vmatprep.subr.bf16.mxu1 %v3492_v8 }
 0xdde   : > { %3407 = vrot.lane.b32.xlu1 %v3818_v28, %s4053_s24 }
 0xdf9   : > { %v1906_v11 = vpop.xlane.xlu0 %1905 }
 0xdfa   : > { %3455 = vrcp.f32 %v1906_v11 }
 0xdfd   : > { %v3413_v49 = vpop.permute.xlu0 %3412 }
 0xdfe   : > { %v3415_v50 = vunpack.i.h.bf16 %v3413_v49  ;;  %v3414_v51 = vunpack.i.l.bf16 %v3413_v49  ;;  %v3053_v49 = vld [vmem:[%s4013_s14] ss:$0 sm:$0xff] }
 0xe00   : > { %v3356_v53 = vpack.c.bf16 %v3415_v50, %v3414_v51  ;;  %v3054_v51 = vld [vmem:[%s4014_s15] ss:$0 sm:$0xff] }
 0xe04   : > { %v3456_v16 = vpop.eup %3455 }
 0xe5a   : > { %v2082_v12 = vpop.xlane.xlu1 %2081 }
 0xe5b   : > { %3457 = vrcp.f32 %v2082_v12 }
 0xe5e   : > { %v3408_v13 = vpop.permute.xlu1 %3407 }
 0xe5f   : > { %v3410_v17 = vunpack.i.h.bf16 %v3408_v13  ;;  %v3409_v18 = vunpack.i.l.bf16 %v3408_v13 }
 0xe61   : > { %v3352_v26 = vpack.c.bf16 %v3410_v17, %v3409_v18 }
 0xe65   : > { %v3458_v23 = vpop.eup %3457 }
 0xe9b   : > { %v1984_v7 = vpop.f32.mrb[26].mxu1 }
 0xe9c   : > { %v1989_v20 = vmul.f32 %v3456_v16, %v1984_v7  ;;  %v3244_v21 = vpop.f32.mrb[27].mxu1 }
 0xe9e   : > { %v1990_v22 = vpack.c.bf16 %v1989_v20, %v1989_v20  ;;  %v2659_v20 = vsel %vm1119_vm4, %v1816_v59, 0 }
 0xe9f   : > { %v2159_v29 = vpop.f32.mrb[28].mxu1 }
 0xea0   : > { %v2164_v30 = vmul.f32 %v3458_v23, %v2159_v29  ;;  %v3258_v31 = vpop.f32.mrb[29].mxu1  ;;  %3268 = vmatmul.mubr.msk.bf16.vlgmr.msra.gmra.mrb[24].mxu0 %vm783_vm2, %v1990_v22 }
 0xea1   : > { %3354 = vmatpush3.bf16.msk.msra.mxu0 %vm3855_vm9, %v3352_v26  ;;  %3282 = vmatprep.mubr.msk.f32.mxu0 %vm3480_vm0, %v3479_v1 }
 0xea2   : > { %v2165_v32 = vpack.c.bf16 %v2164_v30, %v2164_v30  ;;  %3355 = vmatprep.subr.bf16.mxu0 %v3492_v8  ;;  %v3052_v30 = vld [vmem:[%s4012_s13] ss:$0 sm:$0xff] }
 0xea4   : > { %3262 = vmatmul.mubr.msk.bf16.vlgmr.msra.gmra.mrb[32].mxu1 %vm783_vm2, %v2165_v32 }
 0xea5   : > { %3350 = vmatpush3.bf16.xpose.msk.msra.mxu1 %vm3814_vm5, %v3348_v33  ;;  %3275 = vmatprep.mubr.msk.f32.mxu1 %vm3480_vm0, %v3479_v1 }
 0xea6   : > { %3285 = vmatprep.subr.bf16.mxu1 %v3479_v1 }
 0xeac   : > { %3276 = vmatmul.mubr.msk.f32.vlgmr.msra.gmra.mrb[30].mxu1 %vm783_vm2, %v2259_v10 }
 0xead   : > { %3287 = vmatprep.mubr.msk.bf16.mxu1 %vm3480_vm0, %v3479_v1  ;;  %3286 = vmatpush3.bf16.msra.mxu1 %v2437_v56  ;;  %v3055_v56 = vld [vmem:[%s4016_s17] ss:$0 sm:$0xff] }
 0xeae   : > { %3359 = vmatprep.subr.bf16.mxu1 %v3492_v8 }
 0xf73   : > { %v2252_v34 = vpop.f32.mrb[24].mxu0 }
 0xf74   : > { %v3269_v35 = vpop.f32.mrb[25].mxu0 }
 0xf75   : > { %v2255_v37 = vpop.f32.mrb[26].mxu0 }
 0xf76   : > { %v3270_v14 = vpop.f32.mrb[27].mxu0 }
 0xf77   : > { %v2206_v15 = vpop.f32.mrb[32].mxu1 }
 0xf78   : > { %v3899_v38 = vadd.f32 %v2252_v34, %v2206_v15  ;;  %v3263_v39 = vpop.f32.mrb[33].mxu1 }
 0xf79   : > { %v2209_v40 = vpop.f32.mrb[34].mxu1 }
 0xf7a   : > { %v3264_v41 = vpop.f32.mrb[35].mxu1 }
 0xf7f   : > { %v2336_v42 = vpop.f32.mrb[30].mxu1 }
 0xf80   : > { %v2340_v43 = vmul.f32 0.35355338, %v2336_v42  ;;  %v3277_v44 = vpop.f32.mrb[31].mxu1  ;;  %v3427_v42 = vld [vmem:[%s4015_s16] sm:$0xff]  }
 0xf81   : > { %v3430_v44 = vld [vmem:[%s4017_s18 + $0x8] sm:$0xff]  }
 0xf82   : > { %v2341_v45 = vsel %vm1897_vm6, %v2340_v43, -inf }
 0xf83   : > { %2342 = vmax.xlane.f32.xlu1 %v2341_v45 }
 0xf94   : > { %2480 = vrot.lane.b32.xlu1 %v3831_v36, %s4050_s0 }
0x1010   : > { %v2343_v46 = vpop.xlane.xlu1 %2342 }
0x1011   : > { %v2344_v47 = vsub.f32 %v2340_v43, %v2343_v46  ;;  %v3429_v43 = vld [vmem:[%s4017_s18] sm:$0xff]  }
0x1013   : > { %v2345_v48 = vmul.f32 1.442695, %v2344_v47 }
0x1014   : > { %v2481_v36 = vpop.permute.xlu1 %2480 }
0x1015   : > { %3459 = vpow2.f32 %v2345_v48 }
0x101f   : > { %v3460_v52 = vpop.eup %3459 }
0x1020   : > { %3283 = vmatmul.mubr.msk.f32.vlgmr.msra.gmra.mrb[22].mxu0 %vm1897_vm6, %v3460_v52  ;;  %v2347_v54 = vsel %vm1897_vm6, %v3460_v52, 0.0 }
0x1021   : > { %3358 = vmatpush3.bf16.xpose.msk.msra.mxu0 %vm3814_vm5, %v3356_v53  ;;  %2348 = vadd.xlane.f32.xlu1 %v2347_v54 }
0x1022   : > { %3295 = vmatprep.mubr.msk.f32.mxu0 %vm3480_vm0, %v3479_v1  ;;  %3305 = vmatprep.subr.bf16.mxu0 %v3479_v1 }
0x1028   : > { %3296 = vmatmul.mubr.msk.f32.vlgmr.msra.gmra.mrb[28].mxu0 %vm783_vm2, %v2481_v36  ;;  %v3431_v36 = vld [vmem:[%s4017_s18 + $0x10] sm:$0xff]  }
0x1029   : > { %3307 = vmatprep.mubr.msk.bf16.mxu0 %vm3480_vm0, %v3479_v1  ;;  %3306 = vmatpush3.bf16.msra.mxu0 %v2659_v20  ;;  %v3066_v20 = vld [vmem:[%s4020_s21] ss:$0 sm:$0xff] }
0x102a   : > { %3319 = vmatprep.subr.bf16.mxu0 %v3479_v1 }
0x10ae   : > { %v2349_v27 = vpop.xlane.xlu1 %2348 }
0x10af   : > { %3461 = vrcp.f32 %v2349_v27 }
0x10b9   : > { %v3462_v57 = vpop.eup %3461 }
0x10f3   : > { %v2426_v58 = vpop.f32.mrb[22].mxu0 }
0x10f4   : > { %v2431_v60 = vmul.f32 %v3462_v57, %v2426_v58  ;;  %v3284_v61 = vpop.f32.mrb[23].mxu0 }
0x10f6   : > { %v2432_v62 = vpack.c.bf16 %v2431_v60, %v2431_v60 }
0x10f8   : > { %3288 = vmatmul.mubr.msk.bf16.vlgmr.msra.gmra.mrb[36].mxu1 %vm783_vm2, %v2432_v62 }
0x10f9   : > { %3302 = vmatprep.mubr.msk.f32.mxu1 %vm3480_vm0, %v3479_v1 }
0x10fb   : > { %v2558_v63 = vpop.f32.mrb[28].mxu0 }
0x10fc   : > { %v2562_v3 = vmul.f32 0.35355338, %v2558_v63  ;;  %v3297_v0 = vpop.f32.mrb[29].mxu0 }
0x10fe   : > { %v2563_v2 = vsel %vm1897_vm6, %v2562_v3, -inf }
0x10ff   : > { %2564 = vmax.xlane.f32.xlu0 %v2563_v2 }
0x1115   : > { %3417 = vrot.lane.b32.xlu0 %v3818_v28, %s4054_s5 }
0x118c   : > { %v2565_v8 = vpop.xlane.xlu0 %2564 }
0x118d   : > { %v2566_v4 = vsub.f32 %v2562_v3, %v2565_v8 }
0x118f   : > { %v2567_v5 = vmul.f32 1.442695, %v2566_v4 }
0x1190   : > { %v3418_v6 = vpop.permute.xlu0 %3417 }
0x1191   : > { %3463 = vpow2.f32 %v2567_v5  ;;  %v3420_v9 = vunpack.i.h.bf16 %v3418_v6  ;;  %v3419_v10 = vunpack.i.l.bf16 %v3418_v6 }
0x1193   : > { %v3360_v11 = vpack.c.bf16 %v3420_v9, %v3419_v10 }
0x1195   : > { %3362 = vmatpush3.bf16.msk.msra.mxu1 %vm3855_vm9, %v3360_v11 }
0x1196   : > { %3311 = vmatprep.subr.bf16.mxu1 %v3479_v1 }
0x119b   : > { %v3464_v12 = vpop.eup %3463 }
0x119c   : > { %3303 = vmatmul.mubr.msk.f32.vlgmr.msra.gmra.mrb[40].mxu1 %vm1897_vm6, %v3464_v12  ;;  %v2569_v13 = vsel %vm1897_vm6, %v3464_v12, 0.0 }
0x119d   : > { %2570 = vadd.xlane.f32.xlu1 %v2569_v13  ;;  %3315 = vmatprep.mubr.msk.bf16.mxu1 %vm3480_vm0, %v3479_v1 }
0x119e   : > { %3312 = vmatpush3.bf16.msra.mxu1 %v3427_v42 }
0x119f   : > { %3313 = vmatprep.subr.bf16.mxu1 %v3479_v1 }
0x11cb   : > { %v2473_v28 = vpop.f32.mrb[36].mxu1 }
0x11cc   : > { %v2479_v16 = vadd.f32 %v2473_v28, %v3899_v38  ;;  %v3289_v17 = vpop.f32.mrb[37].mxu1 }
0x11cd   : > { %v2476_v18 = vpop.f32.mrb[38].mxu1 }
0x11ce   : > { %v3290_v7 = vpop.f32.mrb[39].mxu1 }
0x11cf   : > { %v3065_v7 = vld [vmem:[%s4019_s20] ss:$0 sm:$0xff] }
0x122a   : > { %v2571_v21 = vpop.xlane.xlu1 %2570 }
0x122b   : > { %3465 = vrcp.f32 %v2571_v21 }
0x1235   : > { %v3466_v22 = vpop.eup %3465 }
0x126f   : > { %v2648_v23 = vpop.f32.mrb[40].mxu1 }
0x1270   : > { %v2653_v24 = vmul.f32 %v3466_v22, %v2648_v23  ;;  %v3304_v25 = vpop.f32.mrb[41].mxu1 }
0x1272   : > { %v2654_v26 = vpack.c.bf16 %v2653_v24, %v2653_v24 }
0x1274   : > { %3308 = vmatmul.mubr.msk.bf16.vlgmr.msra.gmra.mrb[32].mxu0 %vm783_vm2, %v2654_v26 }
0x1275   : > { %3327 = vmatprep.mubr.msk.bf16.mxu0 %vm3480_vm0, %v3479_v1  ;;  %3320 = vmatpush3.bf16.msra.mxu0 %v3429_v43 }
0x1276   : > { %3321 = vmatprep.subr.bf16.mxu0 %v3479_v1 }
0x1279   : > { %3322 = vmatpush3.bf16.msra.mxu0 %v3430_v44 }
0x127a   : > { %3323 = vmatprep.subr.bf16.mxu0 %v3479_v1 }
0x127d   : > { %3324 = vmatpush3.bf16.msra.mxu0 %v3431_v36 }
0x127e   : > { %3325 = vmatprep.subr.bf16.mxu0 %v3479_v1  ;;  %v3059_v1 = vld [vmem:[%s4018_s19] ss:$0 sm:$0xff] }
0x1281   : > { %3326 = vmatpush3.bf16.msra.mxu0 %v3432_v55 }
0x1347   : > { %v2695_v29 = vpop.f32.mrb[32].mxu0 }
0x1348   : > { %v2701_v31 = vadd.f32 %v2695_v29, %v2479_v16  ;;  %v3309_v32 = vpop.f32.mrb[33].mxu0 }
0x1349   : > { %v2698_v33 = vpop.f32.mrb[34].mxu0 }
0x134a   : > { %v2709_v34 = vadd.f32 %v3052_v30, %v2701_v31  ;;  %v3310_v35 = vpop.f32.mrb[35].mxu0 }
0x134c   : > { %v2710_v37 = vadd.f32 %v2709_v34, %v3802_v19  ;;  %v3428_v19 = vld [vmem:[%s4015_s16 + $0x8] sm:$0xff]  }
0x134d   : > { %3314 = vmatpush3.bf16.msra.mxu1 %v3428_v19 }
0x134e   : > { %v2711_v14 = vsel %vm727_vm1, %v2710_v37, 0.0 }
0x134f   : > { %2712 = vadd.xlane.f32.xlu1 %v2711_v14 }
0x13dc   : > { %v2713_v15 = vpop.xlane.xlu1 %2712 }
0x13dd   : > { %v2714_v38 = vmul.f32 0.03125, %v2713_v15 }
0x13df   : > { %v2715_v39 = vsub.f32 %v2710_v37, %v2714_v38 }
0x13e1   : > { %v2716_v40 = vmul.f32 %v2715_v39, %v2715_v39 }
0x13e3   : > { %v2717_v41 = vsel %vm727_vm1, %v2716_v40, 0.0 }
0x13e4   : > { %2718 = vadd.xlane.f32.xlu1 %v2717_v41 }
0x1471   : > { %v2719_v45 = vpop.xlane.xlu1 %2718 }
0x1472   : > { %v2720_v46 = vmul.f32 0.03125, %v2719_v45 }
0x1474   : > { %v2721_v47 = vadd.f32 1e-05, %v2720_v46 }
0x1476   : > { %3467 = vrsqrt.f32 %v2721_v47 }
0x1480   : > { %v3468_v48 = vpop.eup %3467 }
0x1481   : > { %v2723_v50 = vmul.f32 %v3468_v48, %v2715_v39 }
0x1483   : > { %v2731_v52 = vmul.f32 %v3053_v49, %v2723_v50 }
0x1485   : > { %v2739_v53 = vadd.f32 %v3054_v51, %v2731_v52 }
0x1487   : > { %v2740_v54 = vpack.c.bf16 %v2739_v53, %v2739_v53 }
0x1489   : > { %3316 = vmatmul.mubr.msk.bf16.vlgmr.msra.gmra.mrb[44].mxu1 %vm727_vm1, %v2740_v54 }
0x155c   : > { %v2801_v27 = vpop.f32.mrb[44].mxu1 }
0x155d   : > { %v2802_v57 = vadd.f32 %v3055_v56, %v2801_v27  ;;  %v3317_v58 = vpop.f32.mrb[45].mxu1 }
0x155e   : > { %v2804_v60 = vpop.f32.mrb[46].mxu1 }
0x155f   : > { %v2807_v61 = vmax.f32 %v2802_v57, 0.0  ;;  %v3318_v62 = vpop.f32.mrb[47].mxu1 }
0x1561   : > { %v2808_v63 = vpack.c.bf16 %v2807_v61, %v2807_v61 }
0x1563   : > { %3328 = vmatmul.mubr.msk.bf16.vlgmr.msra.gmra.mrb[36].mxu0 %vm2848_vm10, %v2808_v63 }
0x1636   : > { %v2886_v3 = vpop.f32.mrb[36].mxu0 }
0x1637   : > { %v2887_v0 = vadd.f32 %v3059_v1, %v2886_v3  ;;  %v3329_v2 = vpop.f32.mrb[37].mxu0 }
0x1638   : > { %v2889_v8 = vpop.f32.mrb[38].mxu0 }
0x1639   : > { %v3330_v4 = vpop.f32.mrb[39].mxu0  ;;  %v2892_v5 = vadd.f32 %v2887_v0, %v2739_v53 }
0x163b   : > { %v2893_v6 = vsel %vm727_vm1, %v2892_v5, 0.0 }
0x163c   : > { %2894 = vadd.xlane.f32.xlu1 %v2893_v6 }
0x16c9   : > { %v2895_v9 = vpop.xlane.xlu1 %2894 }
0x16ca   : > { %v2896_v10 = vmul.f32 0.03125, %v2895_v9 }
0x16cc   : > { %v2897_v11 = vsub.f32 %v2892_v5, %v2896_v10 }
0x16ce   : > { %v2898_v12 = vmul.f32 %v2897_v11, %v2897_v11 }
0x16d0   : > { %v2899_v13 = vsel %vm727_vm1, %v2898_v12, 0.0 }
0x16d1   : > { %2900 = vadd.xlane.f32.xlu1 %v2899_v13 }
0x175e   : > { %v2901_v28 = vpop.xlane.xlu1 %2900 }
0x175f   : > { %v2902_v16 = vmul.f32 0.03125, %v2901_v28 }
0x1761   : > { %v2903_v17 = vadd.f32 1e-05, %v2902_v16 }
0x1763   : > { %3469 = vrsqrt.f32 %v2903_v17 }
0x176d   : > { %v3470_v18 = vpop.eup %3469 }
0x176e   : > { %v2905_v59 = vmul.f32 %v3470_v18, %v2897_v11 }
0x1770   : > { %v2913_v21 = vmul.f32 %v3065_v7, %v2905_v59 }
0x1772   : > { %v2921_v22 = vadd.f32 %v3066_v20, %v2913_v21 }
0x1774   : > { %2922 = vst.msk [vmem:[%s698_s2] sm:$0xff] %vm727_vm1, %v2921_v22 }
0x1775 PF: > { %s32_s3 = sadd.s32 1, %s3477_s3  }
0x1776   : > { %p29_p4 = scmp.ge.s32.totalorder %s32_s3, 4  }
0x1778   :  { %31 = sbr.rel (!%p29_p4) target bundleno = 8 (0x8), region = 141 }

</bundles_post_ra>
